<compile_context>
chip_gen: v7x
topology: tpu7x:2x2x1
jax: 0.10.0
libtpu: 0.0.40
codegen_flags: <defaults>
</compile_context>

<pallas_src>
import functools

import jax
import jax.numpy as jnp
from jax.experimental import pallas as pl
from jax.experimental.pallas import tpu as pltpu


def _round_up(x, m):
    return (x + m - 1) // m * m


# ----------------------------------------------------------------------------
# Kernel: one (H-tile, C2-tile) grid step.
# ----------------------------------------------------------------------------
def _conv_bn_leaky_kernel(x_ref, w_ref, b_ref, o_ref, *, leaky):
    # x_ref: (1, TH+KH-1, Wout_pad+KW-1, C1)  bf16  halo'd input row slab
    # w_ref: (KH, KW, C1, TC2)                bf16  conv weight, BN scale folded
    # b_ref: (1, TC2)                         f32   folded conv-bias + BN bias
    # o_ref: (1, TH*Wout_pad, TC2)                  output tile
    kh, kw, c1, _ = w_ref.shape
    thk = x_ref.shape[1]
    wpad_in = x_ref.shape[2]
    tile_h = thk - (kh - 1)
    wout_pad = wpad_in - (kw - 1)
    m = tile_h * wout_pad

    # KH*KW shifted matmuls on the MXU; f32 accumulation in vregs (no VMEM
    # scratch round trips).
    acc = None
    for j in range(kw):
        # One W-axis (sublane) shifted slice per kw tap — KW slices per tile.
        xw = x_ref[0, :, j:j + wout_pad, :]                 # (THK, Wout_pad, C1)
        for i in range(kh):
            # Leading-dim slice is free; the merge is layout-preserving
            # because Wout_pad % 8 == 0 (enforced by the wrapper).
            lhs = xw[i:i + tile_h].reshape(m, c1)
            contrib = jnp.dot(lhs, w_ref[i, j],
                              preferred_element_type=jnp.float32)
            acc = contrib if acc is None else acc + contrib

    # Folded BN bias + LeakyReLU(0.1); epilogue in f32 (v5e-safe), cast once.
    y = acc + b_ref[0]
    if leaky:
        y = jnp.where(y > 0, y, 0.1 * y)
    o_ref[0] = y.astype(o_ref.dtype)


# ----------------------------------------------------------------------------
# Generation-aware sizing helpers.
# ----------------------------------------------------------------------------
def _vmem_limit_bytes():
    """Scoped-VMEM limit derived from the chip (v7x: 64 MiB, v5e/v6e: 128 MiB)."""
    cap = 64 * 1024 * 1024                      # conservative fallback (v7x)
    try:
        cap = int(pltpu.get_tpu_info().vmem_capacity_bytes)
    except Exception:
        pass
    return max(32 * 1024 * 1024, min(int(cap * 0.7), 112 * 1024 * 1024))


def _pick_tile_h(hout, wout_pad, wpad_in, c1, tile_c2, kh, kw, out_bytes, budget):
    """Largest TH whose (double-buffered) VMEM working set fits the budget."""
    def need(th):
        thk = th + kh - 1
        in_b = 2 * thk * _round_up(wpad_in, 8) * _round_up(c1, 128) * 2
        w_b = kh * kw * _round_up(c1, 8) * _round_up(tile_c2, 128) * 2
        out_b = 2 * _round_up(th * wout_pad, 8) * _round_up(tile_c2, 128) * out_bytes
        acc_b = _round_up(th * wout_pad, 8) * _round_up(tile_c2, 128) * 4
        return in_b + w_b + out_b + acc_b

    for cand in (512, 256, 128, 64, 32, 16, 8, 4, 2, 1):
        th = min(cand, hout)
        if need(th) <= budget:
            return th
    return 1


def _block_spec(shape, index_map, single_buffered=False):
    """BlockSpec helper; requests single buffering when supported/asked."""
    if single_buffered and hasattr(pl, "Buffered"):
        try:
            return pl.BlockSpec(shape, index_map, pipeline_mode=pl.Buffered(1))
        except TypeError:
            pass
    return pl.BlockSpec(shape, index_map)


# ----------------------------------------------------------------------------
# Wrapper: Conv2d(s=1,d=1,g=1) + BatchNorm2d (inference) + LeakyReLU(0.1).
# ----------------------------------------------------------------------------
def conv_bn_leaky(x_nchw, weight, conv_bias, gamma, beta, run_mean, run_var,
                  *, k, s=1, p=0, d=1, g=1, leaky=True, eps=1e-5, tile_h=None):
    assert s == 1 and d == 1 and g == 1, "kernel supports s=1, d=1, g=1 only"
    n, c1, h, w = x_nchw.shape
    c2 = weight.shape[0]
    kh = kw = k

    hout = h + 2 * p - kh + 1
    wout = w + 2 * p - kw + 1
    assert hout > 0 and wout > 0

    # Layout invariants: Wout padded to a multiple of 8 (layout-preserving
    # reshapes in-kernel); extra columns come from zero padding and are
    # sliced off afterwards.
    wout_pad = _round_up(wout, 8)
    wpad_in = wout_pad + kw - 1

    # C2 tiling (inner grid axis) keeps weight/out blocks small on wide layers
    # while staying lane-dense (multiples of 128 whenever we actually split).
    if c2 % 256 == 0 and c2 > 256:
        tile_c2 = 256
    elif c2 % 128 == 0 and c2 > 128:
        tile_c2 = 128
    else:
        tile_c2 = c2
    n_c2 = c2 // tile_c2

    out_dtype = x_nchw.dtype
    vmem_limit = _vmem_limit_bytes()
    if tile_h is None:
        tile_h = _pick_tile_h(hout, wout_pad, wpad_in, c1, tile_c2, kh, kw,
                              jnp.dtype(out_dtype).itemsize,
                              budget=vmem_limit // 2)
    tile_h = max(1, min(int(tile_h), hout))

    n_tiles = pl.cdiv(hout, tile_h)
    hout_pad = n_tiles * tile_h
    thk = tile_h + kh - 1

    # ---- wrapper glue (XLA): NHWC, spatial zero pad, halo'd H tiles.  No KW
    # replication; the only inflation is the (KH-1)-row halo per tile.
    x_nhwc = jnp.transpose(x_nchw, (0, 2, 3, 1)).astype(jnp.bfloat16)
    x_padded = jnp.pad(
        x_nhwc,
        ((0, 0), (p, p + hout_pad - hout), (p, p + wout_pad - wout), (0, 0)))
    # x_padded: (N, hout_pad + KH - 1, wout_pad + KW - 1, C1)

    if n_tiles == 1:
        x_tiled = x_padded.reshape(n, 1, thk, wpad_in, c1)
    else:
        x_tiled = jnp.stack(
            [x_padded[:, i * tile_h:i * tile_h + thk] for i in range(n_tiles)],
            axis=1)
    x_tiled = x_tiled.reshape(n * n_tiles, thk, wpad_in, c1)

    # Fold BN (inference) into weights/bias; PyTorch (C2,C1,KH,KW) -> (KH,KW,C1,C2).
    scale = gamma / jnp.sqrt(run_var + eps)                   # (C2,)
    bias = beta + (conv_bias - run_mean) * scale               # (C2,)
    w_packed = (jnp.transpose(weight, (2, 3, 1, 0)) * scale).astype(jnp.bfloat16)
    bias2d = bias.reshape(1, c2).astype(jnp.float32)

    kernel = functools.partial(_conv_bn_leaky_kernel, leaky=leaky)
    m = tile_h * wout_pad

    def _call(single_buffered):
        return pl.pallas_call(
            kernel,
            out_shape=jax.ShapeDtypeStruct((n * n_tiles, m, c2), out_dtype),
            grid_spec=pltpu.PrefetchScalarGridSpec(
                num_scalar_prefetch=0,
                grid=(n * n_tiles, n_c2),
                in_specs=[
                    # Input tile: block index constant along the inner C2 axis
                    # -> fetched once per H tile, not once per C2 step.
                    pl.BlockSpec((1, thk, wpad_in, c1),
                                 lambda t, j: (t, 0, 0, 0)),
                    _block_spec((kh, kw, c1, tile_c2),
                                lambda t, j: (0, 0, 0, j),
                                single_buffered=single_buffered),
                    _block_spec((1, tile_c2),
                                lambda t, j: (0, j),
                                single_buffered=single_buffered),
                ],
                out_specs=pl.BlockSpec((1, m, tile_c2), lambda t, j: (t, 0, j)),
            ),
            compiler_params=pltpu.CompilerParams(
                dimension_semantics=("parallel", "parallel"),
                vmem_limit_bytes=vmem_limit),
        )(x_tiled, w_packed, bias2d)

    want_single_buffer = (n_c2 == 1)   # constant weight/bias block index
    if want_single_buffer:
        try:
            out_tiled = _call(True)
        except Exception:
            # Safety net if this jax build rejects Buffered(1); semantics
            # identical either way.
            out_tiled = _call(False)
    else:
        out_tiled = _call(False)

    # (N*nT, TH*Wout_pad, C2) -> (N, Hout, Wout, C2) -> NCHW.
    out = out_tiled.reshape(n, n_tiles, tile_h, wout_pad, c2)
    out = out.reshape(n, hout_pad, wout_pad, c2)[:, :hout, :wout]
    return jnp.transpose(out, (0, 3, 1, 2))


# ----------------------------------------------------------------------------
# Pure-JAX reference (f32) of the PyTorch module's forward.
# ----------------------------------------------------------------------------
def _reference(x_nchw, weight, conv_bias, gamma, beta, run_mean, run_var,
               *, k, s=1, p=0, d=1, g=1, leaky=True, eps=1e-5):
    y = jax.lax.conv_general_dilated(
        x_nchw.astype(jnp.float32), weight.astype(jnp.float32),
        window_strides=(s, s), padding=[(p, p), (p, p)],
        rhs_dilation=(d, d), feature_group_count=g,
        dimension_numbers=("NCHW", "OIHW", "NCHW"))
    y = y + conv_bias.reshape(1, -1, 1, 1)
    scale = gamma / jnp.sqrt(run_var + eps)
    y = (y - run_mean.reshape(1, -1, 1, 1)) * scale.reshape(1, -1, 1, 1) \
        + beta.reshape(1, -1, 1, 1)
    if leaky:
        y = jnp.where(y > 0, y, 0.1 * y)
    return y.astype(x_nchw.dtype)


if __name__ == "__main__":
    # Conv(c1=4, c2=8, k=3, s=1, p=1) — small deterministic example.
    N, C1, H, W = 2, 4, 16, 16
    C2, K, S, P = 8, 3, 1, 1

    key = jax.random.PRNGKey(0)
    kx, kw_, kb, kg, kbe, km, kv = jax.random.split(key, 7)

    x = jax.random.normal(kx, (N, C1, H, W), jnp.float32)
    weight = jax.random.normal(kw_, (C2, C1, K, K), jnp.float32) * 0.1   # Conv2d weight
    conv_bias = jax.random.normal(kb, (C2,), jnp.float32) * 0.1          # Conv2d bias
    gamma = 1.0 + 0.1 * jax.random.normal(kg, (C2,), jnp.float32)        # BN weight
    beta = 0.1 * jax.random.normal(kbe, (C2,), jnp.float32)              # BN bias
    run_mean = 0.1 * jax.random.normal(km, (C2,), jnp.float32)           # BN running_mean
    run_var = jnp.abs(jax.random.normal(kv, (C2,), jnp.float32)) + 0.5   # BN running_var

    ref = _reference(x, weight, conv_bias, gamma, beta, run_mean, run_var,
                     k=K, s=S, p=P, leaky=True)

    # 1) Explicit tile_h=8: exercises the multi-tile (halo) path.
    out = conv_bn_leaky(x, weight, conv_bias, gamma, beta, run_mean, run_var,
                        k=K, s=S, p=P, leaky=True, tile_h=8)
    out = jax.block_until_ready(out)
    assert out.shape == (N, C2, H, W), out.shape
    # bf16 matmul operands (f32 accumulation) => small deviation vs f32 ref.
    max_diff = float(jnp.max(jnp.abs(out - ref)))
    assert jnp.allclose(out, ref, atol=5e-2, rtol=5e-2), max_diff

    # 2) Auto (generation-aware) tile_h path.
    out_auto = conv_bn_leaky(x, weight, conv_bias, gamma, beta, run_mean,
                             run_var, k=K, s=S, p=P, leaky=True)
    out_auto = jax.block_until_ready(out_auto)
    max_diff_auto = float(jnp.max(jnp.abs(out_auto - ref)))
    assert jnp.allclose(out_auto, ref, atol=5e-2, rtol=5e-2), max_diff_auto

    print("KERNEL_OK")
</pallas_src>

<mosaic_0001>
module attributes {stable_mosaic.version = 11 : i64} {
  func.func @_conv_bn_leaky_kernel(%arg0: i32, %arg1: i32, %arg2: memref<1x10x18x4xbf16, #tpu.memory_space<vmem>>, %arg3: memref<3x3x4x8xbf16, #tpu.memory_space<vmem>>, %arg4: memref<1x8xf32, #tpu.memory_space<vmem>>, %arg5: memref<1x128x8xf32, #tpu.memory_space<vmem>>) attributes {dimension_semantics = [#tpu.dimension_semantics<parallel>, #tpu.dimension_semantics<parallel>], iteration_bounds = array<i64: 4, 1>, scalar_prefetch = 0 : i64, scratch_operands = 0 : i64, tpu.core_type = #tpu.core_type<tc>, window_params = [{transform_indices = @transform_0, window_bounds = array<i64: 1, 10, 18, 4>}, {pipeline_mode = #tpu.pipeline_mode<synchronous>, transform_indices = @transform_1, window_bounds = array<i64: 3, 3, 4, 8>}, {pipeline_mode = #tpu.pipeline_mode<synchronous>, transform_indices = @transform_2, window_bounds = array<i64: 1, 8>}, {transform_indices = @transform_3, window_bounds = array<i64: 1, 128, 8>}]} {
    %c0 = arith.constant 0 : index
    %c0_0 = arith.constant 0 : index
    %c0_1 = arith.constant 0 : index
    %c0_2 = arith.constant 0 : index
    %0 = vector.load %arg2[%c0, %c0_0, %c0_1, %c0_2] : memref<1x10x18x4xbf16, #tpu.memory_space<vmem>>, vector<1x10x16x4xbf16>
    %1 = vector.shape_cast %0 : vector<1x10x16x4xbf16> to vector<10x16x4xbf16>
    %2 = vector.extract_strided_slice %1 {offsets = [0, 0, 0], sizes = [8, 16, 4], strides = [1, 1, 1]} : vector<10x16x4xbf16> to vector<8x16x4xbf16>
    %3 = vector.shape_cast %2 : vector<8x16x4xbf16> to vector<128x4xbf16>
    %c0_3 = arith.constant 0 : index
    %c0_4 = arith.constant 0 : index
    %c0_5 = arith.constant 0 : index
    %c0_6 = arith.constant 0 : index
    %4 = vector.load %arg3[%c0_3, %c0_4, %c0_5, %c0_6] : memref<3x3x4x8xbf16, #tpu.memory_space<vmem>>, vector<1x1x4x8xbf16>
    %5 = vector.shape_cast %4 : vector<1x1x4x8xbf16> to vector<4x8xbf16>
    %cst = arith.constant dense<0.000000e+00> : vector<128x8xf32>
    %6 = tpu.matmul %3, %5, %cst {dimension_numbers = #tpu.dot_dimension_numbers<[1], [0], [0], [1], [0, 0, 1, 1], [], []>} : vector<128x4xbf16>, vector<4x8xbf16>, vector<128x8xf32> -> vector<128x8xf32>
    %7 = vector.extract_strided_slice %1 {offsets = [1, 0, 0], sizes = [8, 16, 4], strides = [1, 1, 1]} : vector<10x16x4xbf16> to vector<8x16x4xbf16>
    %8 = vector.shape_cast %7 : vector<8x16x4xbf16> to vector<128x4xbf16>
    %c1 = arith.constant 1 : index
    %c0_7 = arith.constant 0 : index
    %c0_8 = arith.constant 0 : index
    %c0_9 = arith.constant 0 : index
    %9 = vector.load %arg3[%c1, %c0_7, %c0_8, %c0_9] : memref<3x3x4x8xbf16, #tpu.memory_space<vmem>>, vector<1x1x4x8xbf16>
    %10 = vector.shape_cast %9 : vector<1x1x4x8xbf16> to vector<4x8xbf16>
    %cst_10 = arith.constant dense<0.000000e+00> : vector<128x8xf32>
    %11 = tpu.matmul %8, %10, %cst_10 {dimension_numbers = #tpu.dot_dimension_numbers<[1], [0], [0], [1], [0, 0, 1, 1], [], []>} : vector<128x4xbf16>, vector<4x8xbf16>, vector<128x8xf32> -> vector<128x8xf32>
    %12 = arith.addf %6, %11 : vector<128x8xf32>
    %13 = vector.extract_strided_slice %1 {offsets = [2, 0, 0], sizes = [8, 16, 4], strides = [1, 1, 1]} : vector<10x16x4xbf16> to vector<8x16x4xbf16>
    %14 = vector.shape_cast %13 : vector<8x16x4xbf16> to vector<128x4xbf16>
    %c2 = arith.constant 2 : index
    %c0_11 = arith.constant 0 : index
    %c0_12 = arith.constant 0 : index
    %c0_13 = arith.constant 0 : index
    %15 = vector.load %arg3[%c2, %c0_11, %c0_12, %c0_13] : memref<3x3x4x8xbf16, #tpu.memory_space<vmem>>, vector<1x1x4x8xbf16>
    %16 = vector.shape_cast %15 : vector<1x1x4x8xbf16> to vector<4x8xbf16>
    %cst_14 = arith.constant dense<0.000000e+00> : vector<128x8xf32>
    %17 = tpu.matmul %14, %16, %cst_14 {dimension_numbers = #tpu.dot_dimension_numbers<[1], [0], [0], [1], [0, 0, 1, 1], [], []>} : vector<128x4xbf16>, vector<4x8xbf16>, vector<128x8xf32> -> vector<128x8xf32>
    %18 = arith.addf %12, %17 : vector<128x8xf32>
    %c0_15 = arith.constant 0 : index
    %c0_16 = arith.constant 0 : index
    %c1_17 = arith.constant 1 : index
    %c0_18 = arith.constant 0 : index
    %19 = vector.load %arg2[%c0_15, %c0_16, %c1_17, %c0_18] : memref<1x10x18x4xbf16, #tpu.memory_space<vmem>>, vector<1x10x16x4xbf16>
    %20 = vector.shape_cast %19 : vector<1x10x16x4xbf16> to vector<10x16x4xbf16>
    %21 = vector.extract_strided_slice %20 {offsets = [0, 0, 0], sizes = [8, 16, 4], strides = [1, 1, 1]} : vector<10x16x4xbf16> to vector<8x16x4xbf16>
    %22 = vector.shape_cast %21 : vector<8x16x4xbf16> to vector<128x4xbf16>
    %c0_19 = arith.constant 0 : index
    %c1_20 = arith.constant 1 : index
    %c0_21 = arith.constant 0 : index
    %c0_22 = arith.constant 0 : index
    %23 = vector.load %arg3[%c0_19, %c1_20, %c0_21, %c0_22] : memref<3x3x4x8xbf16, #tpu.memory_space<vmem>>, vector<1x1x4x8xbf16>
    %24 = vector.shape_cast %23 : vector<1x1x4x8xbf16> to vector<4x8xbf16>
    %cst_23 = arith.constant dense<0.000000e+00> : vector<128x8xf32>
    %25 = tpu.matmul %22, %24, %cst_23 {dimension_numbers = #tpu.dot_dimension_numbers<[1], [0], [0], [1], [0, 0, 1, 1], [], []>} : vector<128x4xbf16>, vector<4x8xbf16>, vector<128x8xf32> -> vector<128x8xf32>
    %26 = arith.addf %18, %25 : vector<128x8xf32>
    %27 = vector.extract_strided_slice %20 {offsets = [1, 0, 0], sizes = [8, 16, 4], strides = [1, 1, 1]} : vector<10x16x4xbf16> to vector<8x16x4xbf16>
    %28 = vector.shape_cast %27 : vector<8x16x4xbf16> to vector<128x4xbf16>
    %c1_24 = arith.constant 1 : index
    %c1_25 = arith.constant 1 : index
    %c0_26 = arith.constant 0 : index
    %c0_27 = arith.constant 0 : index
    %29 = vector.load %arg3[%c1_24, %c1_25, %c0_26, %c0_27] : memref<3x3x4x8xbf16, #tpu.memory_space<vmem>>, vector<1x1x4x8xbf16>
    %30 = vector.shape_cast %29 : vector<1x1x4x8xbf16> to vector<4x8xbf16>
    %cst_28 = arith.constant dense<0.000000e+00> : vector<128x8xf32>
    %31 = tpu.matmul %28, %30, %cst_28 {dimension_numbers = #tpu.dot_dimension_numbers<[1], [0], [0], [1], [0, 0, 1, 1], [], []>} : vector<128x4xbf16>, vector<4x8xbf16>, vector<128x8xf32> -> vector<128x8xf32>
    %32 = arith.addf %26, %31 : vector<128x8xf32>
    %33 = vector.extract_strided_slice %20 {offsets = [2, 0, 0], sizes = [8, 16, 4], strides = [1, 1, 1]} : vector<10x16x4xbf16> to vector<8x16x4xbf16>
    %34 = vector.shape_cast %33 : vector<8x16x4xbf16> to vector<128x4xbf16>
    %c2_29 = arith.constant 2 : index
    %c1_30 = arith.constant 1 : index
    %c0_31 = arith.constant 0 : index
    %c0_32 = arith.constant 0 : index
    %35 = vector.load %arg3[%c2_29, %c1_30, %c0_31, %c0_32] : memref<3x3x4x8xbf16, #tpu.memory_space<vmem>>, vector<1x1x4x8xbf16>
    %36 = vector.shape_cast %35 : vector<1x1x4x8xbf16> to vector<4x8xbf16>
    %cst_33 = arith.constant dense<0.000000e+00> : vector<128x8xf32>
    %37 = tpu.matmul %34, %36, %cst_33 {dimension_numbers = #tpu.dot_dimension_numbers<[1], [0], [0], [1], [0, 0, 1, 1], [], []>} : vector<128x4xbf16>, vector<4x8xbf16>, vector<128x8xf32> -> vector<128x8xf32>
    %38 = arith.addf %32, %37 : vector<128x8xf32>
    %c0_34 = arith.constant 0 : index
    %c0_35 = arith.constant 0 : index
    %c2_36 = arith.constant 2 : index
    %c0_37 = arith.constant 0 : index
    %39 = vector.load %arg2[%c0_34, %c0_35, %c2_36, %c0_37] : memref<1x10x18x4xbf16, #tpu.memory_space<vmem>>, vector<1x10x16x4xbf16>
    %40 = vector.shape_cast %39 : vector<1x10x16x4xbf16> to vector<10x16x4xbf16>
    %41 = vector.extract_strided_slice %40 {offsets = [0, 0, 0], sizes = [8, 16, 4], strides = [1, 1, 1]} : vector<10x16x4xbf16> to vector<8x16x4xbf16>
    %42 = vector.shape_cast %41 : vector<8x16x4xbf16> to vector<128x4xbf16>
    %c0_38 = arith.constant 0 : index
    %c2_39 = arith.constant 2 : index
    %c0_40 = arith.constant 0 : index
    %c0_41 = arith.constant 0 : index
    %43 = vector.load %arg3[%c0_38, %c2_39, %c0_40, %c0_41] : memref<3x3x4x8xbf16, #tpu.memory_space<vmem>>, vector<1x1x4x8xbf16>
    %44 = vector.shape_cast %43 : vector<1x1x4x8xbf16> to vector<4x8xbf16>
    %cst_42 = arith.constant dense<0.000000e+00> : vector<128x8xf32>
    %45 = tpu.matmul %42, %44, %cst_42 {dimension_numbers = #tpu.dot_dimension_numbers<[1], [0], [0], [1], [0, 0, 1, 1], [], []>} : vector<128x4xbf16>, vector<4x8xbf16>, vector<128x8xf32> -> vector<128x8xf32>
    %46 = arith.addf %38, %45 : vector<128x8xf32>
    %47 = vector.extract_strided_slice %40 {offsets = [1, 0, 0], sizes = [8, 16, 4], strides = [1, 1, 1]} : vector<10x16x4xbf16> to vector<8x16x4xbf16>
    %48 = vector.shape_cast %47 : vector<8x16x4xbf16> to vector<128x4xbf16>
    %c1_43 = arith.constant 1 : index
    %c2_44 = arith.constant 2 : index
    %c0_45 = arith.constant 0 : index
    %c0_46 = arith.constant 0 : index
    %49 = vector.load %arg3[%c1_43, %c2_44, %c0_45, %c0_46] : memref<3x3x4x8xbf16, #tpu.memory_space<vmem>>, vector<1x1x4x8xbf16>
    %50 = vector.shape_cast %49 : vector<1x1x4x8xbf16> to vector<4x8xbf16>
    %cst_47 = arith.constant dense<0.000000e+00> : vector<128x8xf32>
    %51 = tpu.matmul %48, %50, %cst_47 {dimension_numbers = #tpu.dot_dimension_numbers<[1], [0], [0], [1], [0, 0, 1, 1], [], []>} : vector<128x4xbf16>, vector<4x8xbf16>, vector<128x8xf32> -> vector<128x8xf32>
    %52 = arith.addf %46, %51 : vector<128x8xf32>
    %53 = vector.extract_strided_slice %40 {offsets = [2, 0, 0], sizes = [8, 16, 4], strides = [1, 1, 1]} : vector<10x16x4xbf16> to vector<8x16x4xbf16>
    %54 = vector.shape_cast %53 : vector<8x16x4xbf16> to vector<128x4xbf16>
    %c2_48 = arith.constant 2 : index
    %c2_49 = arith.constant 2 : index
    %c0_50 = arith.constant 0 : index
    %c0_51 = arith.constant 0 : index
    %55 = vector.load %arg3[%c2_48, %c2_49, %c0_50, %c0_51] : memref<3x3x4x8xbf16, #tpu.memory_space<vmem>>, vector<1x1x4x8xbf16>
    %56 = vector.shape_cast %55 : vector<1x1x4x8xbf16> to vector<4x8xbf16>
    %cst_52 = arith.constant dense<0.000000e+00> : vector<128x8xf32>
    %57 = tpu.matmul %54, %56, %cst_52 {dimension_numbers = #tpu.dot_dimension_numbers<[1], [0], [0], [1], [0, 0, 1, 1], [], []>} : vector<128x4xbf16>, vector<4x8xbf16>, vector<128x8xf32> -> vector<128x8xf32>
    %58 = arith.addf %52, %57 : vector<128x8xf32>
    %c0_53 = arith.constant 0 : index
    %c0_54 = arith.constant 0 : index
    %59 = vector.load %arg4[%c0_53, %c0_54] : memref<1x8xf32, #tpu.memory_space<vmem>>, vector<1x8xf32>
    %60 = vector.shape_cast %59 : vector<1x8xf32> to vector<8xf32>
    %61 = vector.shape_cast %60 : vector<8xf32> to vector<1x8xf32>
    %62 = vector.broadcast %61 : vector<1x8xf32> to vector<128x8xf32>
    %63 = arith.addf %58, %62 : vector<128x8xf32>
    %cst_55 = arith.constant 0.000000e+00 : f32
    %64 = vector.broadcast %cst_55 : f32 to vector<128x8xf32>
    %65 = arith.cmpf ogt, %63, %64 : vector<128x8xf32>
    %cst_56 = arith.constant 1.000000e-01 : f32
    %66 = vector.broadcast %cst_56 : f32 to vector<128x8xf32>
    %67 = arith.mulf %66, %63 : vector<128x8xf32>
    %68 = arith.select %65, %63, %67 : vector<128x8xi1>, vector<128x8xf32>
    %c0_57 = arith.constant 0 : index
    %c0_58 = arith.constant 0 : index
    %c0_59 = arith.constant 0 : index
    %69 = vector.load %arg5[%c0_57, %c0_58, %c0_59] : memref<1x128x8xf32, #tpu.memory_space<vmem>>, vector<1x128x8xf32>
    %70 = vector.shape_cast %69 : vector<1x128x8xf32> to vector<128x8xf32>
    %71 = vector.shape_cast %68 : vector<128x8xf32> to vector<1x128x8xf32>
    tpu.vector_store %arg5[%c0_57, %c0_58, %c0_59], %71 {strides = array<i32>} : memref<1x128x8xf32, #tpu.memory_space<vmem>>, vector<1x128x8xf32>,
    return
  }
  func.func @transform_0(%arg0: i32, %arg1: i32) -> (i32, i32, i32, i32) {
    %c0_i32 = arith.constant 0 : i32
    %c0_i32_0 = arith.constant 0 : i32
    %c0_i32_1 = arith.constant 0 : i32
    %c0_i32_2 = arith.constant 0 : i32
    return %arg0, %c0_i32, %c0_i32_0, %c0_i32_1 : i32, i32, i32, i32
  }
  func.func @transform_1(%arg0: i32, %arg1: i32) -> (i32, i32, i32, i32) {
    %c0_i32 = arith.constant 0 : i32
    %c0_i32_0 = arith.constant 0 : i32
    %c0_i32_1 = arith.constant 0 : i32
    %c0_i32_2 = arith.constant 0 : i32
    return %c0_i32, %c0_i32_0, %c0_i32_1, %arg1 : i32, i32, i32, i32
  }
  func.func @transform_2(%arg0: i32, %arg1: i32) -> (i32, i32) {
    %c0_i32 = arith.constant 0 : i32
    %c0_i32_0 = arith.constant 0 : i32
    return %c0_i32, %arg1 : i32, i32
  }
  func.func @transform_3(%arg0: i32, %arg1: i32) -> (i32, i32, i32) {
    %c0_i32 = arith.constant 0 : i32
    %c0_i32_0 = arith.constant 0 : i32
    return %arg0, %c0_i32, %arg1 : i32, i32, i32
  }
}

module attributes {stable_mosaic.version = 11 : i64} {
  func.func @_conv_bn_leaky_kernel(%arg0: i32, %arg1: i32, %arg2: memref<1x10x18x4xbf16, #tpu.memory_space<vmem>>, %arg3: memref<3x3x4x8xbf16, #tpu.memory_space<vmem>>, %arg4: memref<1x8xf32, #tpu.memory_space<vmem>>, %arg5: memref<1x128x8xf32, #tpu.memory_space<vmem>>) attributes {dimension_semantics = [#tpu.dimension_semantics<parallel>, #tpu.dimension_semantics<parallel>], iteration_bounds = array<i64: 4, 1>, scalar_prefetch = 0 : i64, scratch_operands = 0 : i64, tpu.core_type = #tpu.core_type<tc>, window_params = [{transform_indices = @transform_0, window_bounds = array<i64: 1, 10, 18, 4>}, {transform_indices = @transform_1, window_bounds = array<i64: 3, 3, 4, 8>}, {transform_indices = @transform_2, window_bounds = array<i64: 1, 8>}, {transform_indices = @transform_3, window_bounds = array<i64: 1, 128, 8>}]} {
    %c0 = arith.constant 0 : index
    %c0_0 = arith.constant 0 : index
    %c0_1 = arith.constant 0 : index
    %c0_2 = arith.constant 0 : index
    %0 = vector.load %arg2[%c0, %c0_0, %c0_1, %c0_2] : memref<1x10x18x4xbf16, #tpu.memory_space<vmem>>, vector<1x10x16x4xbf16>
    %1 = vector.shape_cast %0 : vector<1x10x16x4xbf16> to vector<10x16x4xbf16>
    %2 = vector.extract_strided_slice %1 {offsets = [0, 0, 0], sizes = [8, 16, 4], strides = [1, 1, 1]} : vector<10x16x4xbf16> to vector<8x16x4xbf16>
    %3 = vector.shape_cast %2 : vector<8x16x4xbf16> to vector<128x4xbf16>
    %c0_3 = arith.constant 0 : index
    %c0_4 = arith.constant 0 : index
    %c0_5 = arith.constant 0 : index
    %c0_6 = arith.constant 0 : index
    %4 = vector.load %arg3[%c0_3, %c0_4, %c0_5, %c0_6] : memref<3x3x4x8xbf16, #tpu.memory_space<vmem>>, vector<1x1x4x8xbf16>
    %5 = vector.shape_cast %4 : vector<1x1x4x8xbf16> to vector<4x8xbf16>
    %cst = arith.constant dense<0.000000e+00> : vector<128x8xf32>
    %6 = tpu.matmul %3, %5, %cst {dimension_numbers = #tpu.dot_dimension_numbers<[1], [0], [0], [1], [0, 0, 1, 1], [], []>} : vector<128x4xbf16>, vector<4x8xbf16>, vector<128x8xf32> -> vector<128x8xf32>
    %7 = vector.extract_strided_slice %1 {offsets = [1, 0, 0], sizes = [8, 16, 4], strides = [1, 1, 1]} : vector<10x16x4xbf16> to vector<8x16x4xbf16>
    %8 = vector.shape_cast %7 : vector<8x16x4xbf16> to vector<128x4xbf16>
    %c1 = arith.constant 1 : index
    %c0_7 = arith.constant 0 : index
    %c0_8 = arith.constant 0 : index
    %c0_9 = arith.constant 0 : index
    %9 = vector.load %arg3[%c1, %c0_7, %c0_8, %c0_9] : memref<3x3x4x8xbf16, #tpu.memory_space<vmem>>, vector<1x1x4x8xbf16>
    %10 = vector.shape_cast %9 : vector<1x1x4x8xbf16> to vector<4x8xbf16>
    %cst_10 = arith.constant dense<0.000000e+00> : vector<128x8xf32>
    %11 = tpu.matmul %8, %10, %cst_10 {dimension_numbers = #tpu.dot_dimension_numbers<[1], [0], [0], [1], [0, 0, 1, 1], [], []>} : vector<128x4xbf16>, vector<4x8xbf16>, vector<128x8xf32> -> vector<128x8xf32>
    %12 = arith.addf %6, %11 : vector<128x8xf32>
    %13 = vector.extract_strided_slice %1 {offsets = [2, 0, 0], sizes = [8, 16, 4], strides = [1, 1, 1]} : vector<10x16x4xbf16> to vector<8x16x4xbf16>
    %14 = vector.shape_cast %13 : vector<8x16x4xbf16> to vector<128x4xbf16>
    %c2 = arith.constant 2 : index
    %c0_11 = arith.constant 0 : index
    %c0_12 = arith.constant 0 : index
    %c0_13 = arith.constant 0 : index
    %15 = vector.load %arg3[%c2, %c0_11, %c0_12, %c0_13] : memref<3x3x4x8xbf16, #tpu.memory_space<vmem>>, vector<1x1x4x8xbf16>
    %16 = vector.shape_cast %15 : vector<1x1x4x8xbf16> to vector<4x8xbf16>
    %cst_14 = arith.constant dense<0.000000e+00> : vector<128x8xf32>
    %17 = tpu.matmul %14, %16, %cst_14 {dimension_numbers = #tpu.dot_dimension_numbers<[1], [0], [0], [1], [0, 0, 1, 1], [], []>} : vector<128x4xbf16>, vector<4x8xbf16>, vector<128x8xf32> -> vector<128x8xf32>
    %18 = arith.addf %12, %17 : vector<128x8xf32>
    %c0_15 = arith.constant 0 : index
    %c0_16 = arith.constant 0 : index
    %c1_17 = arith.constant 1 : index
    %c0_18 = arith.constant 0 : index
    %19 = vector.load %arg2[%c0_15, %c0_16, %c1_17, %c0_18] : memref<1x10x18x4xbf16, #tpu.memory_space<vmem>>, vector<1x10x16x4xbf16>
    %20 = vector.shape_cast %19 : vector<1x10x16x4xbf16> to vector<10x16x4xbf16>
    %21 = vector.extract_strided_slice %20 {offsets = [0, 0, 0], sizes = [8, 16, 4], strides = [1, 1, 1]} : vector<10x16x4xbf16> to vector<8x16x4xbf16>
    %22 = vector.shape_cast %21 : vector<8x16x4xbf16> to vector<128x4xbf16>
    %c0_19 = arith.constant 0 : index
    %c1_20 = arith.constant 1 : index
    %c0_21 = arith.constant 0 : index
    %c0_22 = arith.constant 0 : index
    %23 = vector.load %arg3[%c0_19, %c1_20, %c0_21, %c0_22] : memref<3x3x4x8xbf16, #tpu.memory_space<vmem>>, vector<1x1x4x8xbf16>
    %24 = vector.shape_cast %23 : vector<1x1x4x8xbf16> to vector<4x8xbf16>
    %cst_23 = arith.constant dense<0.000000e+00> : vector<128x8xf32>
    %25 = tpu.matmul %22, %24, %cst_23 {dimension_numbers = #tpu.dot_dimension_numbers<[1], [0], [0], [1], [0, 0, 1, 1], [], []>} : vector<128x4xbf16>, vector<4x8xbf16>, vector<128x8xf32> -> vector<128x8xf32>
    %26 = arith.addf %18, %25 : vector<128x8xf32>
    %27 = vector.extract_strided_slice %20 {offsets = [1, 0, 0], sizes = [8, 16, 4], strides = [1, 1, 1]} : vector<10x16x4xbf16> to vector<8x16x4xbf16>
    %28 = vector.shape_cast %27 : vector<8x16x4xbf16> to vector<128x4xbf16>
    %c1_24 = arith.constant 1 : index
    %c1_25 = arith.constant 1 : index
    %c0_26 = arith.constant 0 : index
    %c0_27 = arith.constant 0 : index
    %29 = vector.load %arg3[%c1_24, %c1_25, %c0_26, %c0_27] : memref<3x3x4x8xbf16, #tpu.memory_space<vmem>>, vector<1x1x4x8xbf16>
    %30 = vector.shape_cast %29 : vector<1x1x4x8xbf16> to vector<4x8xbf16>
    %cst_28 = arith.constant dense<0.000000e+00> : vector<128x8xf32>
    %31 = tpu.matmul %28, %30, %cst_28 {dimension_numbers = #tpu.dot_dimension_numbers<[1], [0], [0], [1], [0, 0, 1, 1], [], []>} : vector<128x4xbf16>, vector<4x8xbf16>, vector<128x8xf32> -> vector<128x8xf32>
    %32 = arith.addf %26, %31 : vector<128x8xf32>
    %33 = vector.extract_strided_slice %20 {offsets = [2, 0, 0], sizes = [8, 16, 4], strides = [1, 1, 1]} : vector<10x16x4xbf16> to vector<8x16x4xbf16>
    %34 = vector.shape_cast %33 : vector<8x16x4xbf16> to vector<128x4xbf16>
    %c2_29 = arith.constant 2 : index
    %c1_30 = arith.constant 1 : index
    %c0_31 = arith.constant 0 : index
    %c0_32 = arith.constant 0 : index
    %35 = vector.load %arg3[%c2_29, %c1_30, %c0_31, %c0_32] : memref<3x3x4x8xbf16, #tpu.memory_space<vmem>>, vector<1x1x4x8xbf16>
    %36 = vector.shape_cast %35 : vector<1x1x4x8xbf16> to vector<4x8xbf16>
    %cst_33 = arith.constant dense<0.000000e+00> : vector<128x8xf32>
    %37 = tpu.matmul %34, %36, %cst_33 {dimension_numbers = #tpu.dot_dimension_numbers<[1], [0], [0], [1], [0, 0, 1, 1], [], []>} : vector<128x4xbf16>, vector<4x8xbf16>, vector<128x8xf32> -> vector<128x8xf32>
    %38 = arith.addf %32, %37 : vector<128x8xf32>
    %c0_34 = arith.constant 0 : index
    %c0_35 = arith.constant 0 : index
    %c2_36 = arith.constant 2 : index
    %c0_37 = arith.constant 0 : index
    %39 = vector.load %arg2[%c0_34, %c0_35, %c2_36, %c0_37] : memref<1x10x18x4xbf16, #tpu.memory_space<vmem>>, vector<1x10x16x4xbf16>
    %40 = vector.shape_cast %39 : vector<1x10x16x4xbf16> to vector<10x16x4xbf16>
    %41 = vector.extract_strided_slice %40 {offsets = [0, 0, 0], sizes = [8, 16, 4], strides = [1, 1, 1]} : vector<10x16x4xbf16> to vector<8x16x4xbf16>
    %42 = vector.shape_cast %41 : vector<8x16x4xbf16> to vector<128x4xbf16>
    %c0_38 = arith.constant 0 : index
    %c2_39 = arith.constant 2 : index
    %c0_40 = arith.constant 0 : index
    %c0_41 = arith.constant 0 : index
    %43 = vector.load %arg3[%c0_38, %c2_39, %c0_40, %c0_41] : memref<3x3x4x8xbf16, #tpu.memory_space<vmem>>, vector<1x1x4x8xbf16>
    %44 = vector.shape_cast %43 : vector<1x1x4x8xbf16> to vector<4x8xbf16>
    %cst_42 = arith.constant dense<0.000000e+00> : vector<128x8xf32>
    %45 = tpu.matmul %42, %44, %cst_42 {dimension_numbers = #tpu.dot_dimension_numbers<[1], [0], [0], [1], [0, 0, 1, 1], [], []>} : vector<128x4xbf16>, vector<4x8xbf16>, vector<128x8xf32> -> vector<128x8xf32>
    %46 = arith.addf %38, %45 : vector<128x8xf32>
    %47 = vector.extract_strided_slice %40 {offsets = [1, 0, 0], sizes = [8, 16, 4], strides = [1, 1, 1]} : vector<10x16x4xbf16> to vector<8x16x4xbf16>
    %48 = vector.shape_cast %47 : vector<8x16x4xbf16> to vector<128x4xbf16>
    %c1_43 = arith.constant 1 : index
    %c2_44 = arith.constant 2 : index
    %c0_45 = arith.constant 0 : index
    %c0_46 = arith.constant 0 : index
    %49 = vector.load %arg3[%c1_43, %c2_44, %c0_45, %c0_46] : memref<3x3x4x8xbf16, #tpu.memory_space<vmem>>, vector<1x1x4x8xbf16>
    %50 = vector.shape_cast %49 : vector<1x1x4x8xbf16> to vector<4x8xbf16>
    %cst_47 = arith.constant dense<0.000000e+00> : vector<128x8xf32>
    %51 = tpu.matmul %48, %50, %cst_47 {dimension_numbers = #tpu.dot_dimension_numbers<[1], [0], [0], [1], [0, 0, 1, 1], [], []>} : vector<128x4xbf16>, vector<4x8xbf16>, vector<128x8xf32> -> vector<128x8xf32>
    %52 = arith.addf %46, %51 : vector<128x8xf32>
    %53 = vector.extract_strided_slice %40 {offsets = [2, 0, 0], sizes = [8, 16, 4], strides = [1, 1, 1]} : vector<10x16x4xbf16> to vector<8x16x4xbf16>
    %54 = vector.shape_cast %53 : vector<8x16x4xbf16> to vector<128x4xbf16>
    %c2_48 = arith.constant 2 : index
    %c2_49 = arith.constant 2 : index
    %c0_50 = arith.constant 0 : index
    %c0_51 = arith.constant 0 : index
    %55 = vector.load %arg3[%c2_48, %c2_49, %c0_50, %c0_51] : memref<3x3x4x8xbf16, #tpu.memory_space<vmem>>, vector<1x1x4x8xbf16>
    %56 = vector.shape_cast %55 : vector<1x1x4x8xbf16> to vector<4x8xbf16>
    %cst_52 = arith.constant dense<0.000000e+00> : vector<128x8xf32>
    %57 = tpu.matmul %54, %56, %cst_52 {dimension_numbers = #tpu.dot_dimension_numbers<[1], [0], [0], [1], [0, 0, 1, 1], [], []>} : vector<128x4xbf16>, vector<4x8xbf16>, vector<128x8xf32> -> vector<128x8xf32>
    %58 = arith.addf %52, %57 : vector<128x8xf32>
    %c0_53 = arith.constant 0 : index
    %c0_54 = arith.constant 0 : index
    %59 = vector.load %arg4[%c0_53, %c0_54] : memref<1x8xf32, #tpu.memory_space<vmem>>, vector<1x8xf32>
    %60 = vector.shape_cast %59 : vector<1x8xf32> to vector<8xf32>
    %61 = vector.shape_cast %60 : vector<8xf32> to vector<1x8xf32>
    %62 = vector.broadcast %61 : vector<1x8xf32> to vector<128x8xf32>
    %63 = arith.addf %58, %62 : vector<128x8xf32>
    %cst_55 = arith.constant 0.000000e+00 : f32
    %64 = vector.broadcast %cst_55 : f32 to vector<128x8xf32>
    %65 = arith.cmpf ogt, %63, %64 : vector<128x8xf32>
    %cst_56 = arith.constant 1.000000e-01 : f32
    %66 = vector.broadcast %cst_56 : f32 to vector<128x8xf32>
    %67 = arith.mulf %66, %63 : vector<128x8xf32>
    %68 = arith.select %65, %63, %67 : vector<128x8xi1>, vector<128x8xf32>
    %c0_57 = arith.constant 0 : index
    %c0_58 = arith.constant 0 : index
    %c0_59 = arith.constant 0 : index
    %69 = vector.load %arg5[%c0_57, %c0_58, %c0_59] : memref<1x128x8xf32, #tpu.memory_space<vmem>>, vector<1x128x8xf32>
    %70 = vector.shape_cast %69 : vector<1x128x8xf32> to vector<128x8xf32>
    %71 = vector.shape_cast %68 : vector<128x8xf32> to vector<1x128x8xf32>
    tpu.vector_store %arg5[%c0_57, %c0_58, %c0_59], %71 {strides = array<i32>} : memref<1x128x8xf32, #tpu.memory_space<vmem>>, vector<1x128x8xf32>,
    return
  }
  func.func @transform_0(%arg0: i32, %arg1: i32) -> (i32, i32, i32, i32) {
    %c0_i32 = arith.constant 0 : i32
    %c0_i32_0 = arith.constant 0 : i32
    %c0_i32_1 = arith.constant 0 : i32
    %c0_i32_2 = arith.constant 0 : i32
    return %arg0, %c0_i32, %c0_i32_0, %c0_i32_1 : i32, i32, i32, i32
  }
  func.func @transform_1(%arg0: i32, %arg1: i32) -> (i32, i32, i32, i32) {
    %c0_i32 = arith.constant 0 : i32
    %c0_i32_0 = arith.constant 0 : i32
    %c0_i32_1 = arith.constant 0 : i32
    %c0_i32_2 = arith.constant 0 : i32
    return %c0_i32, %c0_i32_0, %c0_i32_1, %arg1 : i32, i32, i32, i32
  }
  func.func @transform_2(%arg0: i32, %arg1: i32) -> (i32, i32) {
    %c0_i32 = arith.constant 0 : i32
    %c0_i32_0 = arith.constant 0 : i32
    return %c0_i32, %arg1 : i32, i32
  }
  func.func @transform_3(%arg0: i32, %arg1: i32) -> (i32, i32, i32) {
    %c0_i32 = arith.constant 0 : i32
    %c0_i32_0 = arith.constant 0 : i32
    return %arg0, %c0_i32, %arg1 : i32, i32, i32
  }
}

</mosaic_0001>

<bundles_post_ra>
// kernel: tpu_custom_call.1
= control target key start
LH: loop header
LB: loop body
LE: loop exit
PB: predicated region body
PF: predicated region fallthrough
CT: control target
= control target key end

     0   :  { %s2649_s12 = smov 0   ;;  %s2651_s13 = smov 0   ;;  %s3246_s0 = inlined_call_operand.vmem [shape: bf16[4,10,18,4], index: 0, kind: input, shape index: {}]   ;;  %s3247_s1 = inlined_call_operand.vmem [shape: bf16[3,3,4,8], index: 1, kind: input, shape index: {}]   ;;  %s3248_s2 = inlined_call_operand.vmem [shape: f32[1,8], index: 2, kind: input, shape index: {}]   ;;  %s3249_s3 = inlined_call_operand.vmem [shape: f32[4,128,8], index: 3, kind: output, shape index: {}]  }
   0x1   :  { %s2653_s14 = smov 0  }
   0x2 LB: > { %s25_s15 = sadd.s32 1, %s2623_s13  ;;  %p2059_p0 = scmp.ge.s32.totalorder %s2627_s14, 1  ;;  %s2627_s14 = sphi %s2653_s14, %s13_s14   ;;  %s2623_s13 = sphi %s2651_s13, %s3255_s13   ;;  %s2619_s12 = sphi %s2649_s12, %s3254_s12  }
   0x3   : > { %p27_p1 = scmp.ge.s32.totalorder %s25_s15, 4  ;;  %p168_p2 = scmp.lt.s32.totalorder %s2627_s14, 5 }
   0x5   : > { %s3257_s15 = smov (%p27_p1, %s25_s15), 0  ;;  %p169_p3 = pnand %p2059_p0, %p168_p2 }
   0x6   : > { %v2063_v0 = vld [vmem:[%s3247_s1 + $0x6] sm:$0x3] (!%p169_p3)  ;;  %vm311_vm0 = vcmask (!%p169_p3), 1041408   ;;  %p202_p4 = scmp.lt.s32.totalorder (!%p169_p3), %s2619_s12, 3  ;;  %v2675_v2 = vld [vmem:[%s3247_s1 + $0x8] sm:$0x3] (!%p169_p3) }
   0x7   : > { %172 = sbr.rel (%p169_p3) target bundleno = 395 (0x18b), region = 32  ;;  %2560 = vmatprep.subr.msk.bf16.mxu1 (!%p169_p3), %vm311_vm0, %v2063_v0  ;;  %v313_v1 = vsel (!%p169_p3), %vm311_vm0, %v2063_v0, 0  ;;  %v243_v3 = vld [vmem:[%s3247_s1] sm:$0x3] (!%p169_p3)  ;;  %2564 = vmatprep.subr.msk.bf16.mxu0 (!%p169_p3), %vm311_vm0, %v2675_v2  ;;  %v2686_v4 = vsel (!%p169_p3), %vm311_vm0, %v2675_v2, 0  ;;  %vm286_vm1 = vcmask (!%p169_p3), 31744  }
   0x8   : > { %2269 = vmatpush3.bf16.msra.mxu1 (!%p169_p3), %v313_v1  ;;  %2341 = vmatpush3.bf16.msra.mxu0 (!%p169_p3), %v2686_v4  ;;  %v2126_v5 = vld [vmem:[%s3247_s1 + $0xe] sm:$0x3] (!%p169_p3)  ;;  %v2706_v7 = vld [vmem:[%s3247_s1 + $0xc] sm:$0x3] (!%p169_p3)  ;;  %v421_v9 = vsel (!%p169_p3), %vm311_vm0, %v243_v3, 0  ;;  %vm1367_vm5 = vcmask (!%p169_p3), 1042432  }
   0x9   : > { %2561 = vmatprep.subr.msk.bf16.mxu1 (!%p169_p3), %vm311_vm0, %v243_v3  ;;  %2566 = vmatprep.subr.msk.bf16.mxu0 (!%p169_p3), %vm311_vm0, %v2126_v5  ;;  %vm676_vm2 = vsmask.f32 (!%p169_p3), 3328  ;;  %vm677_vm3 = vsmask.f32 (!%p169_p3), 7440  ;;  %v1218_v44 = vsel (!%p169_p3), %vm311_vm0, %v2126_v5, 0  ;;  %vm1368_vm6 = vcmask (!%p169_p3), 1046532  }
   0xa   : > { %vm2749_vm4 = vmor (!%p169_p3), %vm676_vm2, %vm677_vm3  ;;  %vm1931_vm9 = vcmask (!%p169_p3), 64512  }
   0xb   : > { %vm2969_vm7 = vmor (!%p169_p3), %vm1367_vm5, %vm1368_vm6 }
   0xe   : > { %s3259_s12 = smov (!%p202_p4, %s2619_s12), 3 }
   0xf   : > { %s2570_s24 = smul.u32 120, %s3259_s12  ;;  %s2186_s17 = sshll.u32 %s3259_s12, 7 }
  0x10   : > { %s3173_s20 = scalar_lea.vmem %s3249_s3, %s2186_s17 }
  0x11   : > { %s2698_s27 = scalar_lea.vmem %s3246_s0, %s2570_s24 }
  0x12   : > { %v2701_v6 = vld [vmem:[%s2698_s27 + $0xc] sm:$0xff]   ;;  %v2709_v8 = vld [vmem:[%s2698_s27 + $0x18] sm:$0xff]   ;;  %v2715_v10 = vld [vmem:[%s2698_s27 + $0x24] sm:$0xff]  }
  0x13   : > { %2270 = vmatprep.mubr.msk.bf16.mxu1 %vm286_vm1, %v2701_v6  ;;  %v649_v11 = vld [vmem:[%s2698_s27 + $0xc] sm:$0xf]  ;;  %v2723_v12 = vld [vmem:[%s2698_s27 + $0x10] sm:$0xf]  ;;  %v2726_v13 = vld [vmem:[%s2698_s27 + $0x14] sm:$0x1] }
  0x14   : > { %2271 = vmatmul.mubr.msk.bf16.vlgmr.msra.gmra.mrb[0].mxu1 %vm286_vm1, %v2709_v8  ;;  %v704_v14 = vshrl.u32 %v649_v11, 16  ;;  %v707_v15 = vshll.u32 %v649_v11, 16  ;;  %v713_v16 = vshll.u32 %v2723_v12, 16  ;;  %v717_v17 = vshrl.u32 %v2723_v12, 16  ;;  %v2733_v18 = vld [vmem:[%s2698_s27 + $0x30] sm:$0xff]   ;;  %v2744_v29 = vld [vmem:[%s2698_s27 + $0x3c] sm:$0xff]  }
  0x15   : > { %2274 = vmatprep.mubr.msk.bf16.mxu1 %vm286_vm1, %v2715_v10  ;;  %2287 = vmatpush3.bf16.msra.mxu1 %v421_v9  ;;  %v723_v19 = vshll.u32 %v2726_v13, 16  ;;  %v652_v20 = vld [vmem:[%s2698_s27 + $0x18] sm:$0xf]  ;;  %v2738_v25 = vld [vmem:[%s2698_s27 + $0x1c] sm:$0xf]  ;;  %v2766_v49 = vld [vmem:[%s2698_s27 + $0x48] sm:$0xff]  }
  0x16   : > { %2562 = vmatprep.subr.msk.bf16.mxu1 %vm311_vm0, %v2706_v7  ;;  %v706_v21 = vrot.slane %v704_v14, 4  ;;  %v709_v22 = vrot.slane %v707_v15, 5  ;;  %v715_v23 = vrot.slane %v713_v16, 5  ;;  %v719_v24 = vrot.slane %v717_v17, 4  ;;  %v2741_v27 = vld [vmem:[%s2698_s27 + $0x20] sm:$0x1] }
  0x17   : > { %v725_v26 = vrot.slane %v723_v19, 5  ;;  %v728_v28 = vshrl.u32 %v652_v20, 16  ;;  %v731_v32 = vshll.u32 %v652_v20, 16  ;;  %v737_v33 = vshll.u32 %v2738_v25, 16  ;;  %v655_v45 = vld [vmem:[%s2698_s27 + $0x24] sm:$0xf] }
  0x18   : > { %v710_v30 = vor.u32 %v709_v22, %v706_v21  ;;  %v720_v31 = vor.u32 %v719_v24, %v715_v23  ;;  %v741_v36 = vshrl.u32 %v2738_v25, 16  ;;  %v747_v37 = vshll.u32 %v2741_v27, 16  ;;  %v2769_v50 = vld [vmem:[%s2698_s27 + $0x28] sm:$0xf]  ;;  %v2772_v51 = vld [vmem:[%s2698_s27 + $0x2c] sm:$0x1] }
  0x19   : > { %v730_v35 = vrot.slane %v728_v28, 4  ;;  %v733_v40 = vrot.slane %v731_v32, 5  ;;  %v739_v41 = vrot.slane %v737_v33, 5  ;;  %v752_v52 = vshrl.u32 %v655_v45, 16  ;;  %v658_v57 = vld [vmem:[%s2698_s27 + $0x30] sm:$0xf] }
  0x1a   : > { %v711_v38 = vrot.slane %v710_v30, 4  ;;  %v721_v39 = vrot.slane %v720_v31, 4  ;;  %v743_v42 = vrot.slane %v741_v36, 4  ;;  %v749_v43 = vrot.slane %v747_v37, 5  ;;  %v2779_v58 = vld [vmem:[%s2698_s27 + $0x34] sm:$0xf] }
  0x1b   : > { %v734_v48 = vor.u32 %v733_v40, %v730_v35  ;;  %v755_v55 = vshll.u32 %v655_v45, 16  ;;  %v761_v56 = vshll.u32 %v2769_v50, 16  ;;  %v2782_v59 = vld [vmem:[%s2698_s27 + $0x54] sm:$0xff]   ;;  %v754_v61 = vrot.slane %v752_v52, 4  ;;  %v2799_v22 = vld [vmem:[%s3247_s1 + $0x4] sm:$0x3] }
  0x1c   : > { %2275 = vmatmul.mubr.msk.bf16.gmra.mrb[4].mxu1 %vm286_vm1, %v2733_v18  ;;  %v716_v46 = vsel %vm2749_vm4, %v711_v38, %v715_v23  ;;  %v726_v47 = vsel %vm2749_vm4, %v721_v39, %v725_v26  ;;  %v744_v54 = vor.u32 %v743_v42, %v739_v41  ;;  %v765_v62 = vshrl.u32 %v2769_v50, 16  ;;  %v2787_v0 = vld [vmem:[%s2698_s27 + $0x38] sm:$0x1]  ;;  %v661_v33 = vld [vmem:[%s2698_s27 + $0x3c] sm:$0xf] }
  0x1d   : > { %2278 = vmatprep.mubr.msk.bf16.mxu1 %vm286_vm1, %v2744_v29  ;;  %v2774_v53 = vcombine.low %v716_v46, %v726_v47  ;;  %v735_v60 = vrot.slane %v734_v48, 4  ;;  %v771_v63 = vshll.u32 %v2772_v51, 16  ;;  %v757_v3 = vrot.slane %v755_v55, 5  ;;  %v2813_v38 = vld [vmem:[%s2698_s27 + $0x40] sm:$0xf] }
  0x1e   : > { %v745_v1 = vrot.slane %v744_v54, 4  ;;  %v763_v5 = vrot.slane %v761_v56, 5  ;;  %v776_v9 = vshrl.u32 %v658_v57, 16  ;;  %v767_v14 = vrot.slane %v765_v62, 4  ;;  %v2825_v48 = vld [vmem:[%s2698_s27 + $0x44] sm:$0x1] }
  0x1f   : > { %2342 = vmatprep.mubr.msk.bf16.mxu0 %vm286_vm1, %v2774_v53  ;;  %v740_v11 = vsel %vm2749_vm4, %v735_v60, %v739_v41  ;;  %v773_v15 = vrot.slane %v771_v63, 5  ;;  %v779_v16 = vshll.u32 %v658_v57, 16  ;;  %v758_v19 = vor.u32 %v757_v3, %v754_v61  ;;  %v2818_v41 = vld [vmem:[%s2698_s27 + $0x60] sm:$0xff]   ;;  %v664_v52 = vld [vmem:[%s2698_s27 + $0x48] sm:$0xf] }
  0x20   : > { %v750_v17 = vsel %vm2749_vm4, %v745_v1, %v749_v43  ;;  %v778_v20 = vrot.slane %v776_v9, 4  ;;  %v785_v21 = vshll.u32 %v2779_v58, 16  ;;  %v768_v24 = vor.u32 %v767_v14, %v763_v5  ;;  %v2603_v55 = vld [vmem:[%s2698_s27] sm:$0xff]   ;;  %v2834_v61 = vld [vmem:[%s2698_s27 + $0x4c] sm:$0xf] }
  0x21   : > { %v2801_v23 = vcombine.low %v740_v11, %v750_v17  ;;  %v781_v26 = vrot.slane %v779_v16, 5  ;;  %v789_v28 = vshrl.u32 %v2779_v58, 16  ;;  %v759_v30 = vrot.slane %v758_v19, 4  ;;  %v667_v19 = vld [vmem:[%s2698_s27 + $0x54] sm:$0xf] }
  0x22   : > { %v787_v31 = vrot.slane %v785_v21, 5  ;;  %v795_v32 = vshll.u32 %v2787_v0, 16  ;;  %v769_v35 = vrot.slane %v768_v24, 4  ;;  %v800_v42 = vshrl.u32 %v661_v33, 16 }
  0x23   : > { %2343 = vmatmul.mubr.msk.bf16.vlgmr.msra.gmra.mrb[0].mxu0 %vm286_vm1, %v2801_v23  ;;  %v782_v36 = vor.u32 %v781_v26, %v778_v20  ;;  %v791_v37 = vrot.slane %v789_v28, 4  ;;  %v764_v39 = vsel %vm2749_vm4, %v759_v30, %v763_v5  ;;  %v803_v43 = vshll.u32 %v661_v33, 16  ;;  %v2855_v26 = vld [vmem:[%s2698_s27 + $0x58] sm:$0xf]  ;;  %v2858_v28 = vld [vmem:[%s2698_s27 + $0x50] sm:$0x1] }
  0x24   : > { %2279 = vmatmul.mubr.msk.bf16.gmra.mrb[8].mxu1 %vm286_vm1, %v2766_v49  ;;  %2359 = vmatpush3.bf16.msra.mxu0 %v1218_v44  ;;  %v797_v40 = vrot.slane %v795_v32, 5  ;;  %v774_v45 = vsel %vm2749_vm4, %v769_v35, %v773_v15  ;;  %v809_v44 = vshll.u32 %v2813_v38, 16  ;;  %v802_v56 = vrot.slane %v800_v42, 4  ;;  %v670_v42 = vld [vmem:[%s2698_s27 + $0x60] sm:$0xf] }
  0x25   : > { %2282 = vmatprep.mubr.msk.bf16.mxu1 %vm286_vm1, %v2782_v59  ;;  %v783_v46 = vrot.slane %v782_v36, 4  ;;  %v792_v47 = vor.u32 %v791_v37, %v787_v31  ;;  %2567 = vmatprep.subr.msk.bf16.mxu0 %vm311_vm0, %v2799_v22  ;;  %v2829_v54 = vcombine.low %v764_v39, %v774_v45  ;;  %v805_v57 = vrot.slane %v803_v43, 5 }
  0x26   : > { %v813_v60 = vshrl.u32 %v2813_v38, 16  ;;  %v2838_v1 = vrot.slane %v809_v44, 5  ;;  %v819_v5 = vshll.u32 %v2825_v48, 16  ;;  %v824_v9 = vshrl.u32 %v664_v52, 16  ;;  %v2872_v44 = vld [vmem:[%s2698_s27 + $0x64] sm:$0xf] }
  0x27   : > { %v788_v62 = vsel %vm2749_vm4, %v783_v46, %v787_v31  ;;  %v793_v63 = vrot.slane %v792_v47, 4  ;;  %2346 = vmatprep.mubr.msk.bf16.mxu0 %vm286_vm1, %v2829_v54  ;;  %v827_v11 = vshll.u32 %v664_v52, 16  ;;  %v806_v15 = vor.u32 %v805_v57, %v802_v56  ;;  %v2881_v56 = vld [vmem:[%s3247_s1 + $0x2] sm:$0x3] }
  0x28   : > { %v815_v3 = vrot.slane %v813_v60, 4  ;;  %v833_v16 = vshll.u32 %v2834_v61, 16  ;;  %v837_v17 = vshrl.u32 %v2834_v61, 16  ;;  %v826_v24 = vrot.slane %v824_v9, 4  ;;  %v2884_v60 = vld [vmem:[%s2698_s27 + $0x5c] sm:$0x1] }
  0x29   : > { %v798_v14 = vsel %vm2749_vm4, %v793_v63, %v797_v40  ;;  %v829_v30 = vrot.slane %v827_v11, 5  ;;  %v848_v33 = vshrl.u32 %v667_v19, 16  ;;  %v851_v35 = vshll.u32 %v667_v19, 16  ;;  %v673_v11 = vld [vmem:[%s2698_s27 + $0x6c] sm:$0xf] }
  0x2a   : > { %v2850_v20 = vcombine.low %v788_v62, %v798_v14  ;;  %v816_v21 = vor.u32 %v815_v3, %v2838_v1  ;;  %v2860_v31 = vrot.slane %v833_v16, 5  ;;  %v839_v32 = vrot.slane %v837_v17, 4  ;;  %v2905_v19 = vld [vmem:[%s3247_s1 + $0xa] sm:$0x3] }
  0x2b   : > { %v807_v36 = vrot.slane %v806_v15, 4  ;;  %v821_v37 = vrot.slane %v819_v5, 5  ;;  %v830_v39 = vor.u32 %v829_v30, %v826_v24  ;;  %v857_v40 = vshll.u32 %v2855_v26, 16 }
  0x2c   : > { %2283 = vmatmul.mubr.msk.bf16.gmra.mrb[12].mxu1 %vm286_vm1, %v2818_v41  ;;  %2347 = vmatmul.mubr.msk.bf16.gmra.mrb[4].mxu0 %vm286_vm1, %v2850_v20  ;;  %v817_v43 = vrot.slane %v816_v21, 4  ;;  %v840_v45 = vor.u32 %v839_v32, %v2860_v31  ;;  %v843_v46 = vshll.u32 %v2858_v28, 16  ;;  %v861_v47 = vshrl.u32 %v2855_v26, 16  ;;  %v2908_v21 = vld [vmem:[%s2698_s27 + $0x68] sm:$0x1] }
  0x2d   : > { %2288 = vmatprep.mubr.msk.bf16.mxu1 %vm286_vm1, %v2603_v55  ;;  %2360 = vmatprep.mubr.msk.bf16.mxu0 %vm286_vm1, %v2801_v23  ;;  %v1477_v52 = vsel %vm311_vm0, %v2799_v22, 0  ;;  %v531_v55 = vsel %vm311_vm0, %v2706_v7, 0  ;;  %v831_v57 = vrot.slane %v830_v39, 4  ;;  %v850_v62 = vrot.slane %v848_v33, 4 }
  0x2e   : > { %v853_v63 = vrot.slane %v851_v35, 5  ;;  %v1038_v3 = vshrl.u32 %v670_v42, 16  ;;  %v2888_v22 = vrot.slane %v857_v40, 5  ;;  %v863_v5 = vrot.slane %v861_v47, 4 }
  0x2f   : > { %v1041_v7 = vshll.u32 %v670_v42, 16  ;;  %v1047_v9 = vshll.u32 %v2872_v44, 16  ;;  %v812_v14 = vsel %vm2749_vm4, %v807_v36, %v2838_v1  ;;  %v822_v15 = vsel %vm2749_vm4, %v817_v43, %v821_v37 }
  0x30   : > { %v841_v16 = vrot.slane %v840_v45, 4  ;;  %v845_v17 = vrot.slane %v843_v46, 5  ;;  %v1040_v24 = vrot.slane %v1038_v3, 4  ;;  %v1051_v32 = vshrl.u32 %v2872_v44, 16 }
  0x31   : > { %v1043_v1 = vrot.slane %v1041_v7, 5  ;;  %v1049_v30 = vrot.slane %v1047_v9, 5  ;;  %v836_v33 = vsel %vm2749_vm4, %v831_v57, %v2860_v31  ;;  %v854_v35 = vor.u32 %v853_v63, %v850_v62 }
  0x32   : > { %v867_v36 = vshll.u32 %v2884_v60, 16  ;;  %v1186_v37 = vshrl.u32 %v673_v11, 16  ;;  %v864_v39 = vor.u32 %v863_v5, %v2888_v22  ;;  %v1053_v40 = vrot.slane %v1051_v32, 4 }
  0x33   : > { %v1189_v42 = vshll.u32 %v673_v11, 16  ;;  %v846_v45 = vsel %vm2749_vm4, %v841_v16, %v845_v17  ;;  %v1044_v46 = vor.u32 %v1043_v1, %v1040_v24  ;;  %v1057_v31 = vshll.u32 %v2908_v21, 16  ;;  %v2936_v16 = vld [vmem:[%s2698_s27 + $0x74] sm:$0x1]  ;;  %v2941_v24 = vld [vmem:[%s2698_s27 + $0x4] sm:$0xf] }
  0x34   : > { %2289 = vmatmul.mubr.msk.bf16.vlgmr.msra.gmra.mrb[0].mxu1 %vm286_vm1, %v2701_v6  ;;  %v2900_v6 = vld [vmem:[%s2698_s27 + $0x70] sm:$0xf]  ;;  %2361 = vmatmul.mubr.msk.bf16.vlgmr.msra.gmra.mrb[0].mxu0 %vm286_vm1, %v2829_v54  ;;  %v1188_v57 = vrot.slane %v1186_v37, 4  ;;  %v2933_v5 = vcombine.low %v836_v33, %v846_v45  ;;  %v855_v7 = vrot.slane %v854_v35, 4  ;;  %v865_v9 = vrot.slane %v864_v39, 4 }
  0x35   : > { %2292 = vmatprep.mubr.msk.bf16.mxu1 %vm286_vm1, %v2709_v8  ;;  %2305 = vmatpush3.bf16.msra.mxu1 %v531_v55  ;;  %v1195_v43 = vshll.u32 %v2900_v6, 16  ;;  %v1199_v47 = vshrl.u32 %v2900_v6, 16  ;;  %v1054_v55 = vor.u32 %v1053_v40, %v1049_v30  ;;  %v1191_v62 = vrot.slane %v1189_v42, 5  ;;  %v1334_v39 = vld [vmem:[%s2698_s27 + $0xc] sm:$0xe] }
  0x36   : > { %2563 = vmatprep.subr.msk.bf16.mxu1 %vm311_vm0, %v2881_v56  ;;  %2377 = vmatpush3.bf16.msra.mxu0 %v1477_v52  ;;  %v2929_v52 = vcombine.low %v812_v14, %v822_v15  ;;  %v869_v11 = vrot.slane %v867_v36, 5  ;;  %v1045_v14 = vrot.slane %v1044_v46, 4  ;;  %v1059_v17 = vrot.slane %v1057_v31, 5  ;;  %v1333_v45 = vld [vmem:[%s2698_s27] sm:$0xe] }
  0x37   : > { %2364 = vmatprep.mubr.msk.bf16.mxu0 %vm286_vm1, %v2850_v20  ;;  %2568 = vmatprep.subr.msk.bf16.mxu0 %vm311_vm0, %v2905_v19  ;;  %v1197_v63 = vrot.slane %v1195_v43, 5  ;;  %v1201_v3 = vrot.slane %v1199_v47, 4  ;;  %v1055_v15 = vrot.slane %v1054_v55, 4  ;;  %v1192_v1 = vor.u32 %v1191_v62, %v1188_v57 }
  0x38   : > { %v1205_v33 = vshll.u32 %v2936_v16, 16  ;;  %v1379_v35 = vrot.slane %v2723_v12, 5  ;;  %v860_v36 = vsel %vm2749_vm4, %v855_v7, %v2888_v22  ;;  %v870_v37 = vsel %vm2749_vm4, %v865_v9, %v869_v11  ;;  %v648_v12 = vld [vmem:[%s2698_s27 + $0x8] sm:$0x1] }
  0x39   : > { %v1202_v32 = vor.u32 %v1201_v3, %v1197_v63  ;;  %v1050_v40 = vsel %vm2749_vm4, %v1045_v14, %v1049_v30  ;;  %v1060_v42 = vsel %vm2749_vm4, %v1055_v15, %v1059_v17  ;;  %v1372_v43 = vrot.slane %v2941_v24, 5  ;;  %v1335_v14 = vld [vmem:[%s2698_s27 + $0x18] sm:$0xe] }
  0x3a   : > { %v2962_v46 = vcombine.low %v860_v36, %v870_v37  ;;  %v1193_v22 = vrot.slane %v1192_v1, 4  ;;  %v1207_v47 = vrot.slane %v1205_v33, 5  ;;  %v2137_v55 = vrot.slane %v1334_v39, 9 }
  0x3b   : > { %v1203_v31 = vrot.slane %v1202_v32, 4  ;;  %v1381_v57 = vrot.slane %v1379_v35, 4  ;;  %v1382_v30 = vrot.slane %v2726_v13, 5  ;;  %v2967_v62 = vcombine.low %v1050_v40, %v1060_v42  ;;  %v646_v13 = vld [vmem:[%s2698_s27] sm:$0xf] }
  0x3c   : > { %2293 = vmatmul.mubr.msk.bf16.gmra.mrb[4].mxu1 %vm286_vm1, %v2715_v10  ;;  %2365 = vmatmul.mubr.msk.bf16.gmra.mrb[4].mxu0 %vm286_vm1, %v2929_v52  ;;  %v2136_v7 = vrot.slane %v1333_v45, 9  ;;  %v1374_v9 = vrot.slane %v1372_v43, 4  ;;  %v1375_v11 = vrot.slane %v648_v12, 5  ;;  %v1386_v15 = vrot.slane %v2738_v25, 5  ;;  %v1341_v40 = vld [vmem:[%s2698_s27 + $0x60] sm:$0xe] }
  0x3d   : > { %2296 = vmatprep.mubr.msk.bf16.mxu1 %vm286_vm1, %v2733_v18  ;;  %2368 = vmatprep.mubr.msk.bf16.mxu0 %vm286_vm1, %v2933_v5  ;;  %v1198_v17 = vsel %vm2749_vm4, %v1193_v22, %v1197_v63  ;;  %v1208_v1 = vsel %vm2749_vm4, %v1203_v31, %v1207_v47  ;;  %v1380_v32 = vsel %vm2969_vm7, %v2137_v55, %v1379_v35  ;;  %v2138_v25 = vrot.slane %v1335_v14, 9 }
  0x3e   : > { %v1383_v33 = vsel %vm2969_vm7, %v1381_v57, %v1382_v30  ;;  %v1373_v36 = vsel %vm2969_vm7, %v2136_v7, %v1372_v43  ;;  %v1376_v63 = vsel %vm2969_vm7, %v1374_v9, %v1375_v11  ;;  %v680_v37 = vshrl.u32 %v646_v13, 16  ;;  %v1342_v30 = vld [vmem:[%s2698_s27 + $0x6c] sm:$0xe] }
  0x3f   : > { %v683_v39 = vshll.u32 %v646_v13, 16  ;;  %v2127_v42 = vcombine.low %v1198_v17, %v1208_v1  ;;  %v1388_v45 = vrot.slane %v1386_v15, 4  ;;  %v1389_v35 = vrot.slane %v2741_v27, 5 }
  0x40   : > { %v689_v22 = vshll.u32 %v2941_v24, 16  ;;  %v682_v31 = vrot.slane %v680_v37, 4  ;;  %v693_v55 = vshrl.u32 %v2941_v24, 16  ;;  %v699_v57 = vshll.u32 %v648_v12, 16 }
  0x41   : > { %v685_v47 = vrot.slane %v683_v39, 5  ;;  %v2145_v43 = vcombine.low %v1373_v36, %v1376_v63  ;;  %v2161_v9 = vrot.slane %v1341_v40, 9  ;;  %v1597_v11 = vrot.slane %v2872_v44, 5 }
  0x42   : > { %v691_v7 = vrot.slane %v689_v22, 5  ;;  %v1387_v27 = vsel %vm2969_vm7, %v2138_v25, %v1386_v15  ;;  %v1393_v14 = vrot.slane %v2769_v50, 5  ;;  %v695_v12 = vrot.slane %v693_v55, 4  ;;  %v1336_v15 = vld [vmem:[%s2698_s27 + $0x24] sm:$0xe] }
  0x43   : > { %v686_v24 = vor.u32 %v685_v47, %v682_v31  ;;  %v1598_v13 = vsel %vm2969_vm7, %v2161_v9, %v1597_v11  ;;  %v1599_v17 = vrot.slane %v1597_v11, 4  ;;  %v1600_v1 = vrot.slane %v2908_v21, 5  ;;  %v1338_v11 = vld [vmem:[%s2698_s27 + $0x3c] sm:$0xe] }
  0x44   : > { %2297 = vmatmul.mubr.msk.bf16.gmra.mrb[8].mxu1 %vm286_vm1, %v2744_v29  ;;  %2369 = vmatmul.mubr.msk.bf16.gmra.mrb[8].mxu0 %vm286_vm1, %v2962_v46  ;;  %v2172_v36 = vrot.slane %v1342_v30, 9  ;;  %v701_v63 = vrot.slane %v699_v57, 5  ;;  %v1731_v37 = vrot.slane %v2900_v6, 5  ;;  %v1390_v50 = vsel %vm2969_vm7, %v1388_v45, %v1389_v35  ;;  %v1337_v35 = vld [vmem:[%s2698_s27 + $0x30] sm:$0xe] }
  0x45   : > { %2300 = vmatprep.mubr.msk.bf16.mxu1 %vm286_vm1, %v2766_v49  ;;  %2372 = vmatprep.mubr.msk.bf16.mxu0 %vm286_vm1, %v2967_v62  ;;  %v687_v44 = vrot.slane %v686_v24, 4  ;;  %v1400_v25 = vrot.slane %v2779_v58, 5  ;;  %v1601_v21 = vsel %vm2969_vm7, %v1599_v17, %v1600_v1  ;;  %v1734_v39 = vrot.slane %v2936_v16, 5  ;;  %v1339_v24 = vld [vmem:[%s2698_s27 + $0x48] sm:$0xe] }
  0x46   : > { %v3022_v22 = vcombine.low %v1598_v13, %v1601_v21  ;;  %v3026_v6 = vsel %vm2969_vm7, %v2172_v36, %v1731_v37  ;;  %v1611_v45 = vsel %vm311_vm0, %v2905_v19, 0  ;;  %v922_v58 = vsel %vm311_vm0, %v2881_v56, 0 }
  0x47   : > { %v692_v40 = vsel %vm2749_vm4, %v687_v44, %v691_v7  ;;  %v1733_v31 = vrot.slane %v1731_v37, 4  ;;  %v3033_v47 = vcombine.low %v1380_v32, %v1383_v33  ;;  %v2139_v16 = vrot.slane %v1336_v15, 9  ;;  %v2173_v32 = vld [vmem:[%s3247_s1 + $0x10] sm:$0x3] }
  0x48   : > { %v1396_v55 = vrot.slane %v2772_v51, 5  ;;  %v3040_v30 = vcombine.low %v1387_v27, %v1390_v50  ;;  %v2140_v56 = vrot.slane %v1337_v35, 9  ;;  %v1402_v51 = vrot.slane %v1400_v25, 4 }
  0x49   : > { %v1403_v34 = vrot.slane %v2787_v0, 5  ;;  %v1407_v33 = vrot.slane %v2813_v38, 5  ;;  %v1414_v27 = vrot.slane %v2834_v61, 5  ;;  %v2141_v13 = vrot.slane %v1338_v11, 9 }
  0x4a   : > { %v1401_v9 = vsel %vm2969_vm7, %v2140_v56, %v1400_v25  ;;  %v1410_v17 = vrot.slane %v2825_v48, 5  ;;  %v2142_v1 = vrot.slane %v1339_v24, 9  ;;  %v1417_v61 = vrot.slane %v2858_v28, 5  ;;  %v1340_v28 = vld [vmem:[%s2698_s27 + $0x54] sm:$0xe] }
  0x4b   : > { %v1409_v38 = vrot.slane %v1407_v33, 4  ;;  %v1416_v36 = vrot.slane %v1414_v27, 4  ;;  %v1421_v48 = vrot.slane %v2855_v26, 5  ;;  %v2143_v50 = vrot.slane %v1340_v28, 9 }
  0x4c   : > { %2301 = vmatmul.mubr.msk.bf16.gmra.mrb[12].mxu1 %vm286_vm1, %v2782_v59  ;;  %2373 = vmatmul.mubr.msk.bf16.gmra.mrb[12].mxu0 %vm286_vm1, %v2127_v42  ;;  %v1424_v25 = vrot.slane %v2884_v60, 5 }
  0x4d   : > { %2306 = vmatprep.mubr.msk.bf16.mxu1 %vm286_vm1, %v2709_v8  ;;  %v696_v8 = vor.u32 %v695_v12, %v691_v7  ;;  %2378 = vmatprep.mubr.msk.bf16.mxu0 %vm286_vm1, %v2145_v43  ;;  %v1395_v43 = vrot.slane %v1393_v14, 4  ;;  %v3044_v7 = vsel %vm2969_vm7, %v1733_v31, %v1734_v39  ;;  %v1411_v44 = vsel %vm2969_vm7, %v1409_v38, %v1410_v17  ;;  %v2604_v39 = vld [vmem:[%s2698_s27 + $0x6c] sm:$0xff]  }
  0x4e   : > { %v1423_v15 = vrot.slane %v1421_v48, 4  ;;  %v1422_v26 = vsel %vm2969_vm7, %v2143_v50, %v1421_v48 }
  0x4f   : > { %v697_v42 = vrot.slane %v696_v8, 4  ;;  %v1397_v0 = vsel %vm2969_vm7, %v1395_v43, %v1396_v55  ;;  %v1418_v8 = vsel %vm2969_vm7, %v1416_v36, %v1417_v61 }
  0x50   : > { %v1425_v21 = vsel %vm2969_vm7, %v1423_v15, %v1424_v25 }
  0x51   : > { %v702_v57 = vsel %vm2749_vm4, %v697_v42, %v701_v63  ;;  %v3163_v42 = vld [vmem:[%s3248_s2] ss:$0 sm:$0xff] }
  0x52   : > { %v2100_v19 = vcombine.low %v692_v40, %v702_v57 }
  0x54   : > { %2307 = vmatmul.mubr.msk.bf16.vlgmr.msra.gmra.mrb[0].mxu1 %vm286_vm1, %v2715_v10  ;;  %v2174_v10 = vcombine.low %v3026_v6, %v3044_v7  ;;  %2379 = vmatmul.mubr.msk.bf16.vlgmr.msra.gmra.mrb[0].mxu0 %vm286_vm1, %v3033_v47 }
  0x55   : > { %2310 = vmatprep.mubr.msk.bf16.mxu1 %vm286_vm1, %v2733_v18  ;;  %2323 = vmatpush3.bf16.msra.mxu1 %v922_v58  ;;  %v1394_v18 = vsel %vm2969_vm7, %v2139_v16, %v1393_v14 }
  0x56   : > { %2565 = vmatprep.subr.msk.bf16.mxu1 %vm311_vm0, %v2675_v2  ;;  %2395 = vmatpush3.bf16.msra.mxu0 %v1611_v45  ;;  %v1404_v2 = vsel %vm2969_vm7, %v1402_v51, %v1403_v34  ;;  %v2148_v12 = vcombine.low %v1394_v18, %v1397_v0 }
  0x57   : > { %2382 = vmatprep.mubr.msk.bf16.mxu0 %vm286_vm1, %v3040_v30  ;;  %2569 = vmatprep.subr.msk.bf16.mxu0 %vm311_vm0, %v2173_v32  ;;  %v2149_v14 = vcombine.low %v1401_v9, %v1404_v2 }
  0x5c   : > { %2311 = vmatmul.mubr.msk.bf16.gmra.mrb[4].mxu1 %vm286_vm1, %v2744_v29  ;;  %2383 = vmatmul.mubr.msk.bf16.gmra.mrb[4].mxu0 %vm286_vm1, %v2148_v12  ;;  %v1408_v29 = vsel %vm2969_vm7, %v2141_v13, %v1407_v33 }
  0x5d   : > { %2314 = vmatprep.mubr.msk.bf16.mxu1 %vm286_vm1, %v2766_v49  ;;  %2386 = vmatprep.mubr.msk.bf16.mxu0 %vm286_vm1, %v2149_v14  ;;  %v1415_v49 = vsel %vm2969_vm7, %v2142_v1, %v1414_v27  ;;  %v2150_v63 = vcombine.low %v1408_v29, %v1411_v44 }
  0x5e   : > { %v2151_v37 = vcombine.low %v1415_v49, %v1418_v8 }
  0x64   : > { %2315 = vmatmul.mubr.msk.bf16.gmra.mrb[8].mxu1 %vm286_vm1, %v2782_v59  ;;  %2387 = vmatmul.mubr.msk.bf16.gmra.mrb[8].mxu0 %vm286_vm1, %v2150_v63  ;;  %v2152_v59 = vcombine.low %v1422_v26, %v1425_v21 }
  0x65   : > { %2318 = vmatprep.mubr.msk.bf16.mxu1 %vm286_vm1, %v2818_v41  ;;  %2390 = vmatprep.mubr.msk.bf16.mxu0 %vm286_vm1, %v2151_v37  ;;  %v1745_v41 = vsel %vm311_vm0, %v2173_v32, 0 }
  0x6c   : > { %2319 = vmatmul.mubr.msk.bf16.gmra.mrb[12].mxu1 %vm286_vm1, %v2604_v39  ;;  %2391 = vmatmul.mubr.msk.bf16.gmra.mrb[12].mxu0 %vm286_vm1, %v2152_v59 }
  0x6d   : > { %2324 = vmatprep.mubr.msk.bf16.mxu1 %vm286_vm1, %v2100_v19  ;;  %2396 = vmatprep.mubr.msk.bf16.mxu0 %vm286_vm1, %v3033_v47 }
  0x74   : > { %2325 = vmatmul.mubr.msk.bf16.vlgmr.msra.gmra.mrb[0].mxu1 %vm286_vm1, %v2774_v53  ;;  %2397 = vmatmul.mubr.msk.bf16.vlgmr.msra.gmra.mrb[0].mxu0 %vm286_vm1, %v3040_v30 }
  0x75   : > { %2328 = vmatprep.mubr.msk.bf16.mxu1 %vm286_vm1, %v2801_v23  ;;  %2431 = vmatpush3.bf16.msra.mxu1 %v2686_v4 }
  0x76   : > { %2413 = vmatpush3.bf16.msra.mxu0 %v1745_v41  ;;  %2400 = vmatprep.mubr.msk.bf16.mxu0 %vm286_vm1, %v2148_v12 }
  0x7c   : > { %2329 = vmatmul.mubr.msk.bf16.gmra.mrb[4].mxu1 %vm286_vm1, %v2829_v54  ;;  %2401 = vmatmul.mubr.msk.bf16.gmra.mrb[4].mxu0 %vm286_vm1, %v2149_v14 }
  0x7d   : > { %2332 = vmatprep.mubr.msk.bf16.mxu1 %vm286_vm1, %v2850_v20  ;;  %2404 = vmatprep.mubr.msk.bf16.mxu0 %vm286_vm1, %v2150_v63 }
  0x84   : > { %2333 = vmatmul.mubr.msk.bf16.gmra.mrb[8].mxu1 %vm286_vm1, %v2929_v52  ;;  %2405 = vmatmul.mubr.msk.bf16.gmra.mrb[8].mxu0 %vm286_vm1, %v2151_v37 }
  0x85   : > { %2336 = vmatprep.mubr.msk.bf16.mxu1 %vm286_vm1, %v2933_v5  ;;  %2408 = vmatprep.mubr.msk.bf16.mxu0 %vm286_vm1, %v2152_v59 }
  0x8c   : > { %2337 = vmatmul.mubr.msk.bf16.gmra.mrb[12].mxu1 %vm286_vm1, %v2962_v46  ;;  %2409 = vmatmul.mubr.msk.bf16.gmra.mrb[12].mxu0 %vm286_vm1, %v3022_v22 }
  0x8d   : > { %2350 = vmatprep.mubr.msk.bf16.mxu1 %vm286_vm1, %v2929_v52  ;;  %2414 = vmatprep.mubr.msk.bf16.mxu0 %vm286_vm1, %v3040_v30 }
  0x94   : > { %2351 = vmatmul.mubr.msk.bf16.vlgmr.msra.gmra.mrb[8].mxu1 %vm286_vm1, %v2933_v5  ;;  %2415 = vmatmul.mubr.msk.bf16.vlgmr.msra.gmra.mrb[0].mxu0 %vm286_vm1, %v2148_v12 }
  0x95   : > { %2354 = vmatprep.mubr.msk.bf16.mxu1 %vm286_vm1, %v2962_v46  ;;  %2418 = vmatprep.mubr.msk.bf16.mxu0 %vm286_vm1, %v2149_v14 }
  0x9c   : > { %2355 = vmatmul.mubr.msk.bf16.gmra.mrb[12].mxu1 %vm286_vm1, %v2967_v62  ;;  %2419 = vmatmul.mubr.msk.bf16.gmra.mrb[4].mxu0 %vm286_vm1, %v2150_v63 }
  0x9d   : > { %2422 = vmatprep.mubr.msk.bf16.mxu0 %vm286_vm1, %v2151_v37 }
  0xa4   : > { %2423 = vmatmul.mubr.msk.bf16.gmra.mrb[8].mxu0 %vm286_vm1, %v2152_v59 }
  0xa5   : > { %2426 = vmatprep.mubr.msk.bf16.mxu0 %vm286_vm1, %v3022_v22 }
  0xac   : > { %2427 = vmatmul.mubr.msk.bf16.gmra.mrb[12].mxu0 %vm286_vm1, %v2174_v10 }
 0x147   : > { %v2326_v4 = vpop.f32.mrb[0].mxu1 }
 0x148   : > { %v958_v53 = vpop.f32.mrb[1].mxu1 }
 0x149   : > { %v2327_v23 = vpop.f32.mrb[2].mxu1 }
 0x14a   : > { %v961_v54 = vpop.f32.mrb[3].mxu1 }
 0x14f   : > { %v2330_v20 = vpop.f32.mrb[4].mxu1 }
 0x150   : > { %v974_v60 = vpop.f32.mrb[5].mxu1 }
 0x151   : > { %v2331_v52 = vpop.f32.mrb[6].mxu1 }
 0x152   : > { %v977_v5 = vpop.f32.mrb[7].mxu1 }
 0x167   : > { %v3154_v46 = vpop.f32.mrb[8].mxu1  ;;  %v2416_v40 = vpop.f32.mrb[0].mxu0 }
 0x168   : > { %v3156_v62 = vpop.f32.mrb[9].mxu1  ;;  %v2432_v6 = vadd.f32 %v2416_v40, %v2326_v4  ;;  %v1781_v45 = vpop.f32.mrb[1].mxu0 }
 0x169   : > { %v3158_v3 = vpop.f32.mrb[10].mxu1  ;;  %v2433_v35 = vadd.f32 %v1781_v45, %v958_v53  ;;  %v2417_v58 = vpop.f32.mrb[2].mxu0 }
 0x16a   : > { %v3165_v22 = vpop.f32.mrb[11].mxu1  ;;  %v1869_v31 = vadd.f32 %v2432_v6, %v3163_v42  ;;  %v2434_v47 = vadd.f32 %v2417_v58, %v2327_v23  ;;  %v1784_v16 = vpop.f32.mrb[3].mxu0 }
 0x16b   : > { %v1867_v55 = vadd.f32 %v2433_v35, %v3163_v42  ;;  %v2435_v57 = vadd.f32 %v1784_v16, %v961_v54 }
 0x16c   : > { %vm1885_vm8 = vcmp.gt.f32.partialorder %v1869_v31, 0.0  ;;  %v1901_v30 = vmul.f32 0.1, %v1869_v31  ;;  %v1870_v43 = vadd.f32 %v2434_v47, %v3163_v42 }
 0x16d   : > { %vm1883_vm10 = vcmp.gt.f32.partialorder %v1867_v55, 0.0  ;;  %v1899_v7 = vmul.f32 0.1, %v1867_v55  ;;  %v1868_v56 = vadd.f32 %v2435_v57, %v3163_v42 }
 0x16e   : > { %v1917_v34 = vsel %vm1885_vm8, %v1869_v31, %v1901_v30  ;;  %vm1886_vm11 = vcmp.gt.f32.partialorder %v1870_v43, 0.0  ;;  %v1902_v10 = vmul.f32 0.1, %v1870_v43 }
 0x16f   : > { %v3176_v19 = vpop.f32.mrb[12].mxu1  ;;  %1934 = vst.msk [vmem:[%s3173_s20 + $0x10] sm:$0xff] %vm1931_vm9, %v1917_v34  ;;  %v1915_v18 = vsel %vm1883_vm10, %v1867_v55, %v1899_v7  ;;  %vm1884_vm12 = vcmp.gt.f32.partialorder %v1868_v56, 0.0  ;;  %v1900_v0 = vmul.f32 0.1, %v1868_v56  ;;  %v2420_v33 = vpop.f32.mrb[4].mxu0 }
 0x170   : > { %v3179_v51 = vpop.f32.mrb[13].mxu1  ;;  %1932 = vst.msk [vmem:[%s3173_s20] sm:$0xff] %vm1931_vm9, %v1915_v18  ;;  %v1918_v2 = vsel %vm1886_vm11, %v1870_v43, %v1902_v10  ;;  %v2436_v11 = vadd.f32 %v2420_v33, %v2330_v20  ;;  %v1797_v27 = vpop.f32.mrb[5].mxu0 }
 0x171   : > { %v3181_v32 = vpop.f32.mrb[14].mxu1  ;;  %1935 = vst.msk [vmem:[%s3173_s20 + $0x18] sm:$0xff] %vm1931_vm9, %v1918_v2  ;;  %v1916_v24 = vsel %vm1884_vm12, %v1868_v56, %v1900_v0  ;;  %v2437_v12 = vadd.f32 %v1797_v27, %v974_v60  ;;  %v2421_v14 = vpop.f32.mrb[6].mxu0 }
 0x172   : > { %v3185_v9 = vpop.f32.mrb[15].mxu1  ;;  %1933 = vst.msk [vmem:[%s3173_s20 + $0x8] sm:$0xff] %vm1931_vm9, %v1916_v24  ;;  %v1873_v13 = vadd.f32 %v2436_v11, %v3163_v42  ;;  %v2438_v38 = vadd.f32 %v2421_v14, %v2331_v52  ;;  %v1800_v17 = vpop.f32.mrb[7].mxu0 }
 0x173   : > { %v1871_v1 = vadd.f32 %v2437_v12, %v3163_v42  ;;  %v2439_v36 = vadd.f32 %v1800_v17, %v977_v5 }
 0x174   : > { %vm1889_vm13 = vcmp.gt.f32.partialorder %v1873_v13, 0.0  ;;  %v1905_v61 = vmul.f32 0.1, %v1873_v13  ;;  %v1874_v29 = vadd.f32 %v2438_v38, %v3163_v42 }
 0x175   : > { %vm1887_vm14 = vcmp.gt.f32.partialorder %v1871_v1, 0.0  ;;  %v1903_v44 = vmul.f32 0.1, %v1871_v1  ;;  %v1872_v48 = vadd.f32 %v2439_v36, %v3163_v42 }
 0x176   : > { %v1921_v49 = vsel %vm1889_vm13, %v1873_v13, %v1905_v61  ;;  %vm1890_vm15 = vcmp.gt.f32.partialorder %v1874_v29, 0.0  ;;  %v1906_v8 = vmul.f32 0.1, %v1874_v29 }
 0x177   : > { %1938 = vst.msk [vmem:[%s3173_s20 + $0x30] sm:$0xff] %vm1931_vm9, %v1921_v49  ;;  %v1919_v28 = vsel %vm1887_vm14, %v1871_v1, %v1903_v44  ;;  %vm1888_vm0 = vcmp.gt.f32.partialorder %v1872_v48, 0.0  ;;  %v1904_v63 = vmul.f32 0.1, %v1872_v48  ;;  %v2424_v37 = vpop.f32.mrb[8].mxu0 }
 0x178   : > { %1936 = vst.msk [vmem:[%s3173_s20 + $0x20] sm:$0xff] %vm1931_vm9, %v1919_v28  ;;  %v1922_v50 = vsel %vm1890_vm15, %v1874_v29, %v1906_v8  ;;  %v2440_v15 = vadd.f32 %v2424_v37, %v3154_v46  ;;  %v1813_v25 = vpop.f32.mrb[9].mxu0 }
 0x179   : > { %1939 = vst.msk [vmem:[%s3173_s20 + $0x38] sm:$0xff] %vm1931_vm9, %v1922_v50  ;;  %v1920_v26 = vsel %vm1888_vm0, %v1872_v48, %v1904_v63  ;;  %v2441_v21 = vadd.f32 %v1813_v25, %v3156_v62  ;;  %v2425_v39 = vpop.f32.mrb[10].mxu0 }
 0x17a   : > { %1937 = vst.msk [vmem:[%s3173_s20 + $0x28] sm:$0xff] %vm1931_vm9, %v1920_v26  ;;  %v1877_v59 = vadd.f32 %v2440_v15, %v3163_v42  ;;  %v2442_v41 = vadd.f32 %v2425_v39, %v3158_v3  ;;  %v1816_v4 = vpop.f32.mrb[11].mxu0 }
 0x17b   : > { %v1875_v53 = vadd.f32 %v2441_v21, %v3163_v42  ;;  %v2443_v23 = vadd.f32 %v1816_v4, %v3165_v22 }
 0x17c   : > { %vm1893_vm1 = vcmp.gt.f32.partialorder %v1877_v59, 0.0  ;;  %v1909_v54 = vmul.f32 0.1, %v1877_v59  ;;  %v1878_v20 = vadd.f32 %v2442_v41, %v3163_v42 }
 0x17d   : > { %vm1891_vm2 = vcmp.gt.f32.partialorder %v1875_v53, 0.0  ;;  %v1907_v60 = vmul.f32 0.1, %v1875_v53  ;;  %v1876_v52 = vadd.f32 %v2443_v23, %v3163_v42 }
 0x17e   : > { %v1925_v5 = vsel %vm1893_vm1, %v1877_v59, %v1909_v54  ;;  %vm1894_vm3 = vcmp.gt.f32.partialorder %v1878_v20, 0.0  ;;  %v1910_v46 = vmul.f32 0.1, %v1878_v20 }
 0x17f   : > { %1942 = vst.msk [vmem:[%s3173_s20 + $0x50] sm:$0xff] %vm1931_vm9, %v1925_v5  ;;  %v1923_v62 = vsel %vm1891_vm2, %v1875_v53, %v1907_v60  ;;  %vm1892_vm4 = vcmp.gt.f32.partialorder %v1876_v52, 0.0  ;;  %v1908_v3 = vmul.f32 0.1, %v1876_v52  ;;  %v2428_v40 = vpop.f32.mrb[12].mxu0 }
 0x180   : > { %1940 = vst.msk [vmem:[%s3173_s20 + $0x40] sm:$0xff] %vm1931_vm9, %v1923_v62  ;;  %v1926_v22 = vsel %vm1894_vm3, %v1878_v20, %v1910_v46  ;;  %v2444_v6 = vadd.f32 %v2428_v40, %v3176_v19  ;;  %v1829_v45 = vpop.f32.mrb[13].mxu0 }
 0x181   : > { %1943 = vst.msk [vmem:[%s3173_s20 + $0x58] sm:$0xff] %vm1931_vm9, %v1926_v22  ;;  %v1924_v35 = vsel %vm1892_vm4, %v1876_v52, %v1908_v3  ;;  %v2445_v58 = vadd.f32 %v1829_v45, %v3179_v51  ;;  %v2429_v31 = vpop.f32.mrb[14].mxu0 }
 0x182   : > { %1941 = vst.msk [vmem:[%s3173_s20 + $0x48] sm:$0xff] %vm1931_vm9, %v1924_v35  ;;  %v1881_v47 = vadd.f32 %v2444_v6, %v3163_v42  ;;  %v2446_v16 = vadd.f32 %v2429_v31, %v3181_v32  ;;  %v1832_v55 = vpop.f32.mrb[15].mxu0 }
 0x183   : > { %v1879_v57 = vadd.f32 %v2445_v58, %v3163_v42  ;;  %v2447_v30 = vadd.f32 %v1832_v55, %v3185_v9 }
 0x184   : > { %vm1897_vm5 = vcmp.gt.f32.partialorder %v1881_v47, 0.0  ;;  %v1913_v43 = vmul.f32 0.1, %v1881_v47  ;;  %v1882_v19 = vadd.f32 %v2446_v16, %v3163_v42 }
 0x185   : > { %vm1895_vm6 = vcmp.gt.f32.partialorder %v1879_v57, 0.0  ;;  %v1911_v7 = vmul.f32 0.1, %v1879_v57  ;;  %v1880_v56 = vadd.f32 %v2447_v30, %v3163_v42 }
 0x186   : > { %v1929_v51 = vsel %vm1897_vm5, %v1881_v47, %v1913_v43  ;;  %vm1898_vm7 = vcmp.gt.f32.partialorder %v1882_v19, 0.0  ;;  %v1914_v34 = vmul.f32 0.1, %v1882_v19 }
 0x187   : > { %1946 = vst.msk [vmem:[%s3173_s20 + $0x70] sm:$0xff] %vm1931_vm9, %v1929_v51  ;;  %v1927_v10 = vsel %vm1895_vm6, %v1879_v57, %v1911_v7  ;;  %vm1896_vm8 = vcmp.gt.f32.partialorder %v1880_v56, 0.0  ;;  %v1912_v32 = vmul.f32 0.1, %v1880_v56 }
 0x188   : > { %1944 = vst.msk [vmem:[%s3173_s20 + $0x60] sm:$0xff] %vm1931_vm9, %v1927_v10  ;;  %v1930_v18 = vsel %vm1898_vm7, %v1882_v19, %v1914_v34 }
 0x189   : > { %1947 = vst.msk [vmem:[%s3173_s20 + $0x78] sm:$0xff] %vm1931_vm9, %v1930_v18  ;;  %v1928_v0 = vsel %vm1896_vm8, %v1880_v56, %v1912_v32 }
 0x18a   : > { %1945 = vst.msk [vmem:[%s3173_s20 + $0x68] sm:$0xff] %vm1931_vm9, %v1928_v0 }
 0x18b PF: > { %s13_s14 = sadd.s32 1, %s2627_s14   ;;  %s3254_s12 = smov %s2623_s13 }
 0x18c   : > { %p10_p5 = scmp.ge.s32.totalorder %s13_s14, 6   ;;  %s3255_s13 = smov %s3257_s15 }
 0x18e   :  { %12 = sbr.rel (!%p10_p5) target bundleno = 2 (0x2), region = 76 }

// kernel: tpu_custom_call.1
= control target key start
LH: loop header
LB: loop body
LE: loop exit
PB: predicated region body
PF: predicated region fallthrough
CT: control target
= control target key end

     0   :  { %s2649_s12 = smov 0   ;;  %s2651_s13 = smov 0   ;;  %s3246_s0 = inlined_call_operand.vmem [shape: bf16[4,10,18,4], index: 0, kind: input, shape index: {}]   ;;  %s3247_s1 = inlined_call_operand.vmem [shape: bf16[3,3,4,8], index: 1, kind: input, shape index: {}]   ;;  %s3248_s2 = inlined_call_operand.vmem [shape: f32[1,8], index: 2, kind: input, shape index: {}]   ;;  %s3249_s3 = inlined_call_operand.vmem [shape: f32[4,128,8], index: 3, kind: output, shape index: {}]  }
   0x1   :  { %s2653_s14 = smov 0  }
   0x2 LB: > { %s25_s15 = sadd.s32 1, %s2623_s13  ;;  %p2059_p0 = scmp.ge.s32.totalorder %s2627_s14, 1  ;;  %s2627_s14 = sphi %s2653_s14, %s13_s14   ;;  %s2623_s13 = sphi %s2651_s13, %s3255_s13   ;;  %s2619_s12 = sphi %s2649_s12, %s3254_s12  }
   0x3   : > { %p27_p1 = scmp.ge.s32.totalorder %s25_s15, 4  ;;  %p168_p2 = scmp.lt.s32.totalorder %s2627_s14, 5 }
   0x5   : > { %s3257_s15 = smov (%p27_p1, %s25_s15), 0  ;;  %p169_p3 = pnand %p2059_p0, %p168_p2 }
   0x6   : > { %v2063_v0 = vld [vmem:[%s3247_s1 + $0x6] sm:$0x3] (!%p169_p3)  ;;  %vm311_vm0 = vcmask (!%p169_p3), 1041408   ;;  %p202_p4 = scmp.lt.s32.totalorder (!%p169_p3), %s2619_s12, 3  ;;  %v2675_v2 = vld [vmem:[%s3247_s1 + $0x8] sm:$0x3] (!%p169_p3) }
   0x7   : > { %172 = sbr.rel (%p169_p3) target bundleno = 395 (0x18b), region = 32  ;;  %2560 = vmatprep.subr.msk.bf16.mxu1 (!%p169_p3), %vm311_vm0, %v2063_v0  ;;  %v313_v1 = vsel (!%p169_p3), %vm311_vm0, %v2063_v0, 0  ;;  %v243_v3 = vld [vmem:[%s3247_s1] sm:$0x3] (!%p169_p3)  ;;  %2564 = vmatprep.subr.msk.bf16.mxu0 (!%p169_p3), %vm311_vm0, %v2675_v2  ;;  %v2686_v4 = vsel (!%p169_p3), %vm311_vm0, %v2675_v2, 0  ;;  %vm286_vm1 = vcmask (!%p169_p3), 31744  }
   0x8   : > { %2269 = vmatpush3.bf16.msra.mxu1 (!%p169_p3), %v313_v1  ;;  %2341 = vmatpush3.bf16.msra.mxu0 (!%p169_p3), %v2686_v4  ;;  %v2126_v5 = vld [vmem:[%s3247_s1 + $0xe] sm:$0x3] (!%p169_p3)  ;;  %v2706_v7 = vld [vmem:[%s3247_s1 + $0xc] sm:$0x3] (!%p169_p3)  ;;  %v421_v9 = vsel (!%p169_p3), %vm311_vm0, %v243_v3, 0  ;;  %vm1367_vm5 = vcmask (!%p169_p3), 1042432  }
   0x9   : > { %2561 = vmatprep.subr.msk.bf16.mxu1 (!%p169_p3), %vm311_vm0, %v243_v3  ;;  %2566 = vmatprep.subr.msk.bf16.mxu0 (!%p169_p3), %vm311_vm0, %v2126_v5  ;;  %vm676_vm2 = vsmask.f32 (!%p169_p3), 3328  ;;  %vm677_vm3 = vsmask.f32 (!%p169_p3), 7440  ;;  %v1218_v44 = vsel (!%p169_p3), %vm311_vm0, %v2126_v5, 0  ;;  %vm1368_vm6 = vcmask (!%p169_p3), 1046532  }
   0xa   : > { %vm2749_vm4 = vmor (!%p169_p3), %vm676_vm2, %vm677_vm3  ;;  %vm1931_vm9 = vcmask (!%p169_p3), 64512  }
   0xb   : > { %vm2969_vm7 = vmor (!%p169_p3), %vm1367_vm5, %vm1368_vm6 }
   0xe   : > { %s3259_s12 = smov (!%p202_p4, %s2619_s12), 3 }
   0xf   : > { %s2570_s24 = smul.u32 120, %s3259_s12  ;;  %s2186_s17 = sshll.u32 %s3259_s12, 7 }
  0x10   : > { %s3173_s20 = scalar_lea.vmem %s3249_s3, %s2186_s17 }
  0x11   : > { %s2698_s27 = scalar_lea.vmem %s3246_s0, %s2570_s24 }
  0x12   : > { %v2701_v6 = vld [vmem:[%s2698_s27 + $0xc] sm:$0xff]   ;;  %v2709_v8 = vld [vmem:[%s2698_s27 + $0x18] sm:$0xff]   ;;  %v2715_v10 = vld [vmem:[%s2698_s27 + $0x24] sm:$0xff]  }
  0x13   : > { %2270 = vmatprep.mubr.msk.bf16.mxu1 %vm286_vm1, %v2701_v6  ;;  %v649_v11 = vld [vmem:[%s2698_s27 + $0xc] sm:$0xf]  ;;  %v2723_v12 = vld [vmem:[%s2698_s27 + $0x10] sm:$0xf]  ;;  %v2726_v13 = vld [vmem:[%s2698_s27 + $0x14] sm:$0x1] }
  0x14   : > { %2271 = vmatmul.mubr.msk.bf16.vlgmr.msra.gmra.mrb[0].mxu1 %vm286_vm1, %v2709_v8  ;;  %v704_v14 = vshrl.u32 %v649_v11, 16  ;;  %v707_v15 = vshll.u32 %v649_v11, 16  ;;  %v713_v16 = vshll.u32 %v2723_v12, 16  ;;  %v717_v17 = vshrl.u32 %v2723_v12, 16  ;;  %v2733_v18 = vld [vmem:[%s2698_s27 + $0x30] sm:$0xff]   ;;  %v2744_v29 = vld [vmem:[%s2698_s27 + $0x3c] sm:$0xff]  }
  0x15   : > { %2274 = vmatprep.mubr.msk.bf16.mxu1 %vm286_vm1, %v2715_v10  ;;  %2287 = vmatpush3.bf16.msra.mxu1 %v421_v9  ;;  %v723_v19 = vshll.u32 %v2726_v13, 16  ;;  %v652_v20 = vld [vmem:[%s2698_s27 + $0x18] sm:$0xf]  ;;  %v2738_v25 = vld [vmem:[%s2698_s27 + $0x1c] sm:$0xf]  ;;  %v2766_v49 = vld [vmem:[%s2698_s27 + $0x48] sm:$0xff]  }
  0x16   : > { %2562 = vmatprep.subr.msk.bf16.mxu1 %vm311_vm0, %v2706_v7  ;;  %v706_v21 = vrot.slane %v704_v14, 4  ;;  %v709_v22 = vrot.slane %v707_v15, 5  ;;  %v715_v23 = vrot.slane %v713_v16, 5  ;;  %v719_v24 = vrot.slane %v717_v17, 4  ;;  %v2741_v27 = vld [vmem:[%s2698_s27 + $0x20] sm:$0x1] }
  0x17   : > { %v725_v26 = vrot.slane %v723_v19, 5  ;;  %v728_v28 = vshrl.u32 %v652_v20, 16  ;;  %v731_v32 = vshll.u32 %v652_v20, 16  ;;  %v737_v33 = vshll.u32 %v2738_v25, 16  ;;  %v655_v45 = vld [vmem:[%s2698_s27 + $0x24] sm:$0xf] }
  0x18   : > { %v710_v30 = vor.u32 %v709_v22, %v706_v21  ;;  %v720_v31 = vor.u32 %v719_v24, %v715_v23  ;;  %v741_v36 = vshrl.u32 %v2738_v25, 16  ;;  %v747_v37 = vshll.u32 %v2741_v27, 16  ;;  %v2769_v50 = vld [vmem:[%s2698_s27 + $0x28] sm:$0xf]  ;;  %v2772_v51 = vld [vmem:[%s2698_s27 + $0x2c] sm:$0x1] }
  0x19   : > { %v730_v35 = vrot.slane %v728_v28, 4  ;;  %v733_v40 = vrot.slane %v731_v32, 5  ;;  %v739_v41 = vrot.slane %v737_v33, 5  ;;  %v752_v52 = vshrl.u32 %v655_v45, 16  ;;  %v658_v57 = vld [vmem:[%s2698_s27 + $0x30] sm:$0xf] }
  0x1a   : > { %v711_v38 = vrot.slane %v710_v30, 4  ;;  %v721_v39 = vrot.slane %v720_v31, 4  ;;  %v743_v42 = vrot.slane %v741_v36, 4  ;;  %v749_v43 = vrot.slane %v747_v37, 5  ;;  %v2779_v58 = vld [vmem:[%s2698_s27 + $0x34] sm:$0xf] }
  0x1b   : > { %v734_v48 = vor.u32 %v733_v40, %v730_v35  ;;  %v755_v55 = vshll.u32 %v655_v45, 16  ;;  %v761_v56 = vshll.u32 %v2769_v50, 16  ;;  %v2782_v59 = vld [vmem:[%s2698_s27 + $0x54] sm:$0xff]   ;;  %v754_v61 = vrot.slane %v752_v52, 4  ;;  %v2799_v22 = vld [vmem:[%s3247_s1 + $0x4] sm:$0x3] }
  0x1c   : > { %2275 = vmatmul.mubr.msk.bf16.gmra.mrb[4].mxu1 %vm286_vm1, %v2733_v18  ;;  %v716_v46 = vsel %vm2749_vm4, %v711_v38, %v715_v23  ;;  %v726_v47 = vsel %vm2749_vm4, %v721_v39, %v725_v26  ;;  %v744_v54 = vor.u32 %v743_v42, %v739_v41  ;;  %v765_v62 = vshrl.u32 %v2769_v50, 16  ;;  %v2787_v0 = vld [vmem:[%s2698_s27 + $0x38] sm:$0x1]  ;;  %v661_v33 = vld [vmem:[%s2698_s27 + $0x3c] sm:$0xf] }
  0x1d   : > { %2278 = vmatprep.mubr.msk.bf16.mxu1 %vm286_vm1, %v2744_v29  ;;  %v2774_v53 = vcombine.low %v716_v46, %v726_v47  ;;  %v735_v60 = vrot.slane %v734_v48, 4  ;;  %v771_v63 = vshll.u32 %v2772_v51, 16  ;;  %v757_v3 = vrot.slane %v755_v55, 5  ;;  %v2813_v38 = vld [vmem:[%s2698_s27 + $0x40] sm:$0xf] }
  0x1e   : > { %v745_v1 = vrot.slane %v744_v54, 4  ;;  %v763_v5 = vrot.slane %v761_v56, 5  ;;  %v776_v9 = vshrl.u32 %v658_v57, 16  ;;  %v767_v14 = vrot.slane %v765_v62, 4  ;;  %v2825_v48 = vld [vmem:[%s2698_s27 + $0x44] sm:$0x1] }
  0x1f   : > { %2342 = vmatprep.mubr.msk.bf16.mxu0 %vm286_vm1, %v2774_v53  ;;  %v740_v11 = vsel %vm2749_vm4, %v735_v60, %v739_v41  ;;  %v773_v15 = vrot.slane %v771_v63, 5  ;;  %v779_v16 = vshll.u32 %v658_v57, 16  ;;  %v758_v19 = vor.u32 %v757_v3, %v754_v61  ;;  %v2818_v41 = vld [vmem:[%s2698_s27 + $0x60] sm:$0xff]   ;;  %v664_v52 = vld [vmem:[%s2698_s27 + $0x48] sm:$0xf] }
  0x20   : > { %v750_v17 = vsel %vm2749_vm4, %v745_v1, %v749_v43  ;;  %v778_v20 = vrot.slane %v776_v9, 4  ;;  %v785_v21 = vshll.u32 %v2779_v58, 16  ;;  %v768_v24 = vor.u32 %v767_v14, %v763_v5  ;;  %v2603_v55 = vld [vmem:[%s2698_s27] sm:$0xff]   ;;  %v2834_v61 = vld [vmem:[%s2698_s27 + $0x4c] sm:$0xf] }
  0x21   : > { %v2801_v23 = vcombine.low %v740_v11, %v750_v17  ;;  %v781_v26 = vrot.slane %v779_v16, 5  ;;  %v789_v28 = vshrl.u32 %v2779_v58, 16  ;;  %v759_v30 = vrot.slane %v758_v19, 4  ;;  %v667_v19 = vld [vmem:[%s2698_s27 + $0x54] sm:$0xf] }
  0x22   : > { %v787_v31 = vrot.slane %v785_v21, 5  ;;  %v795_v32 = vshll.u32 %v2787_v0, 16  ;;  %v769_v35 = vrot.slane %v768_v24, 4  ;;  %v800_v42 = vshrl.u32 %v661_v33, 16 }
  0x23   : > { %2343 = vmatmul.mubr.msk.bf16.vlgmr.msra.gmra.mrb[0].mxu0 %vm286_vm1, %v2801_v23  ;;  %v782_v36 = vor.u32 %v781_v26, %v778_v20  ;;  %v791_v37 = vrot.slane %v789_v28, 4  ;;  %v764_v39 = vsel %vm2749_vm4, %v759_v30, %v763_v5  ;;  %v803_v43 = vshll.u32 %v661_v33, 16  ;;  %v2855_v26 = vld [vmem:[%s2698_s27 + $0x58] sm:$0xf]  ;;  %v2858_v28 = vld [vmem:[%s2698_s27 + $0x50] sm:$0x1] }
  0x24   : > { %2279 = vmatmul.mubr.msk.bf16.gmra.mrb[8].mxu1 %vm286_vm1, %v2766_v49  ;;  %2359 = vmatpush3.bf16.msra.mxu0 %v1218_v44  ;;  %v797_v40 = vrot.slane %v795_v32, 5  ;;  %v774_v45 = vsel %vm2749_vm4, %v769_v35, %v773_v15  ;;  %v809_v44 = vshll.u32 %v2813_v38, 16  ;;  %v802_v56 = vrot.slane %v800_v42, 4  ;;  %v670_v42 = vld [vmem:[%s2698_s27 + $0x60] sm:$0xf] }
  0x25   : > { %2282 = vmatprep.mubr.msk.bf16.mxu1 %vm286_vm1, %v2782_v59  ;;  %v783_v46 = vrot.slane %v782_v36, 4  ;;  %v792_v47 = vor.u32 %v791_v37, %v787_v31  ;;  %2567 = vmatprep.subr.msk.bf16.mxu0 %vm311_vm0, %v2799_v22  ;;  %v2829_v54 = vcombine.low %v764_v39, %v774_v45  ;;  %v805_v57 = vrot.slane %v803_v43, 5 }
  0x26   : > { %v813_v60 = vshrl.u32 %v2813_v38, 16  ;;  %v2838_v1 = vrot.slane %v809_v44, 5  ;;  %v819_v5 = vshll.u32 %v2825_v48, 16  ;;  %v824_v9 = vshrl.u32 %v664_v52, 16  ;;  %v2872_v44 = vld [vmem:[%s2698_s27 + $0x64] sm:$0xf] }
  0x27   : > { %v788_v62 = vsel %vm2749_vm4, %v783_v46, %v787_v31  ;;  %v793_v63 = vrot.slane %v792_v47, 4  ;;  %2346 = vmatprep.mubr.msk.bf16.mxu0 %vm286_vm1, %v2829_v54  ;;  %v827_v11 = vshll.u32 %v664_v52, 16  ;;  %v806_v15 = vor.u32 %v805_v57, %v802_v56  ;;  %v2881_v56 = vld [vmem:[%s3247_s1 + $0x2] sm:$0x3] }
  0x28   : > { %v815_v3 = vrot.slane %v813_v60, 4  ;;  %v833_v16 = vshll.u32 %v2834_v61, 16  ;;  %v837_v17 = vshrl.u32 %v2834_v61, 16  ;;  %v826_v24 = vrot.slane %v824_v9, 4  ;;  %v2884_v60 = vld [vmem:[%s2698_s27 + $0x5c] sm:$0x1] }
  0x29   : > { %v798_v14 = vsel %vm2749_vm4, %v793_v63, %v797_v40  ;;  %v829_v30 = vrot.slane %v827_v11, 5  ;;  %v848_v33 = vshrl.u32 %v667_v19, 16  ;;  %v851_v35 = vshll.u32 %v667_v19, 16  ;;  %v673_v11 = vld [vmem:[%s2698_s27 + $0x6c] sm:$0xf] }
  0x2a   : > { %v2850_v20 = vcombine.low %v788_v62, %v798_v14  ;;  %v816_v21 = vor.u32 %v815_v3, %v2838_v1  ;;  %v2860_v31 = vrot.slane %v833_v16, 5  ;;  %v839_v32 = vrot.slane %v837_v17, 4  ;;  %v2905_v19 = vld [vmem:[%s3247_s1 + $0xa] sm:$0x3] }
  0x2b   : > { %v807_v36 = vrot.slane %v806_v15, 4  ;;  %v821_v37 = vrot.slane %v819_v5, 5  ;;  %v830_v39 = vor.u32 %v829_v30, %v826_v24  ;;  %v857_v40 = vshll.u32 %v2855_v26, 16 }
  0x2c   : > { %2283 = vmatmul.mubr.msk.bf16.gmra.mrb[12].mxu1 %vm286_vm1, %v2818_v41  ;;  %2347 = vmatmul.mubr.msk.bf16.gmra.mrb[4].mxu0 %vm286_vm1, %v2850_v20  ;;  %v817_v43 = vrot.slane %v816_v21, 4  ;;  %v840_v45 = vor.u32 %v839_v32, %v2860_v31  ;;  %v843_v46 = vshll.u32 %v2858_v28, 16  ;;  %v861_v47 = vshrl.u32 %v2855_v26, 16  ;;  %v2908_v21 = vld [vmem:[%s2698_s27 + $0x68] sm:$0x1] }
  0x2d   : > { %2288 = vmatprep.mubr.msk.bf16.mxu1 %vm286_vm1, %v2603_v55  ;;  %2360 = vmatprep.mubr.msk.bf16.mxu0 %vm286_vm1, %v2801_v23  ;;  %v1477_v52 = vsel %vm311_vm0, %v2799_v22, 0  ;;  %v531_v55 = vsel %vm311_vm0, %v2706_v7, 0  ;;  %v831_v57 = vrot.slane %v830_v39, 4  ;;  %v850_v62 = vrot.slane %v848_v33, 4 }
  0x2e   : > { %v853_v63 = vrot.slane %v851_v35, 5  ;;  %v1038_v3 = vshrl.u32 %v670_v42, 16  ;;  %v2888_v22 = vrot.slane %v857_v40, 5  ;;  %v863_v5 = vrot.slane %v861_v47, 4 }
  0x2f   : > { %v1041_v7 = vshll.u32 %v670_v42, 16  ;;  %v1047_v9 = vshll.u32 %v2872_v44, 16  ;;  %v812_v14 = vsel %vm2749_vm4, %v807_v36, %v2838_v1  ;;  %v822_v15 = vsel %vm2749_vm4, %v817_v43, %v821_v37 }
  0x30   : > { %v841_v16 = vrot.slane %v840_v45, 4  ;;  %v845_v17 = vrot.slane %v843_v46, 5  ;;  %v1040_v24 = vrot.slane %v1038_v3, 4  ;;  %v1051_v32 = vshrl.u32 %v2872_v44, 16 }
  0x31   : > { %v1043_v1 = vrot.slane %v1041_v7, 5  ;;  %v1049_v30 = vrot.slane %v1047_v9, 5  ;;  %v836_v33 = vsel %vm2749_vm4, %v831_v57, %v2860_v31  ;;  %v854_v35 = vor.u32 %v853_v63, %v850_v62 }
  0x32   : > { %v867_v36 = vshll.u32 %v2884_v60, 16  ;;  %v1186_v37 = vshrl.u32 %v673_v11, 16  ;;  %v864_v39 = vor.u32 %v863_v5, %v2888_v22  ;;  %v1053_v40 = vrot.slane %v1051_v32, 4 }
  0x33   : > { %v1189_v42 = vshll.u32 %v673_v11, 16  ;;  %v846_v45 = vsel %vm2749_vm4, %v841_v16, %v845_v17  ;;  %v1044_v46 = vor.u32 %v1043_v1, %v1040_v24  ;;  %v1057_v31 = vshll.u32 %v2908_v21, 16  ;;  %v2936_v16 = vld [vmem:[%s2698_s27 + $0x74] sm:$0x1]  ;;  %v2941_v24 = vld [vmem:[%s2698_s27 + $0x4] sm:$0xf] }
  0x34   : > { %2289 = vmatmul.mubr.msk.bf16.vlgmr.msra.gmra.mrb[0].mxu1 %vm286_vm1, %v2701_v6  ;;  %v2900_v6 = vld [vmem:[%s2698_s27 + $0x70] sm:$0xf]  ;;  %2361 = vmatmul.mubr.msk.bf16.vlgmr.msra.gmra.mrb[0].mxu0 %vm286_vm1, %v2829_v54  ;;  %v1188_v57 = vrot.slane %v1186_v37, 4  ;;  %v2933_v5 = vcombine.low %v836_v33, %v846_v45  ;;  %v855_v7 = vrot.slane %v854_v35, 4  ;;  %v865_v9 = vrot.slane %v864_v39, 4 }
  0x35   : > { %2292 = vmatprep.mubr.msk.bf16.mxu1 %vm286_vm1, %v2709_v8  ;;  %2305 = vmatpush3.bf16.msra.mxu1 %v531_v55  ;;  %v1195_v43 = vshll.u32 %v2900_v6, 16  ;;  %v1199_v47 = vshrl.u32 %v2900_v6, 16  ;;  %v1054_v55 = vor.u32 %v1053_v40, %v1049_v30  ;;  %v1191_v62 = vrot.slane %v1189_v42, 5  ;;  %v1334_v39 = vld [vmem:[%s2698_s27 + $0xc] sm:$0xe] }
  0x36   : > { %2563 = vmatprep.subr.msk.bf16.mxu1 %vm311_vm0, %v2881_v56  ;;  %2377 = vmatpush3.bf16.msra.mxu0 %v1477_v52  ;;  %v2929_v52 = vcombine.low %v812_v14, %v822_v15  ;;  %v869_v11 = vrot.slane %v867_v36, 5  ;;  %v1045_v14 = vrot.slane %v1044_v46, 4  ;;  %v1059_v17 = vrot.slane %v1057_v31, 5  ;;  %v1333_v45 = vld [vmem:[%s2698_s27] sm:$0xe] }
  0x37   : > { %2364 = vmatprep.mubr.msk.bf16.mxu0 %vm286_vm1, %v2850_v20  ;;  %2568 = vmatprep.subr.msk.bf16.mxu0 %vm311_vm0, %v2905_v19  ;;  %v1197_v63 = vrot.slane %v1195_v43, 5  ;;  %v1201_v3 = vrot.slane %v1199_v47, 4  ;;  %v1055_v15 = vrot.slane %v1054_v55, 4  ;;  %v1192_v1 = vor.u32 %v1191_v62, %v1188_v57 }
  0x38   : > { %v1205_v33 = vshll.u32 %v2936_v16, 16  ;;  %v1379_v35 = vrot.slane %v2723_v12, 5  ;;  %v860_v36 = vsel %vm2749_vm4, %v855_v7, %v2888_v22  ;;  %v870_v37 = vsel %vm2749_vm4, %v865_v9, %v869_v11  ;;  %v648_v12 = vld [vmem:[%s2698_s27 + $0x8] sm:$0x1] }
  0x39   : > { %v1202_v32 = vor.u32 %v1201_v3, %v1197_v63  ;;  %v1050_v40 = vsel %vm2749_vm4, %v1045_v14, %v1049_v30  ;;  %v1060_v42 = vsel %vm2749_vm4, %v1055_v15, %v1059_v17  ;;  %v1372_v43 = vrot.slane %v2941_v24, 5  ;;  %v1335_v14 = vld [vmem:[%s2698_s27 + $0x18] sm:$0xe] }
  0x3a   : > { %v2962_v46 = vcombine.low %v860_v36, %v870_v37  ;;  %v1193_v22 = vrot.slane %v1192_v1, 4  ;;  %v1207_v47 = vrot.slane %v1205_v33, 5  ;;  %v2137_v55 = vrot.slane %v1334_v39, 9 }
  0x3b   : > { %v1203_v31 = vrot.slane %v1202_v32, 4  ;;  %v1381_v57 = vrot.slane %v1379_v35, 4  ;;  %v1382_v30 = vrot.slane %v2726_v13, 5  ;;  %v2967_v62 = vcombine.low %v1050_v40, %v1060_v42  ;;  %v646_v13 = vld [vmem:[%s2698_s27] sm:$0xf] }
  0x3c   : > { %2293 = vmatmul.mubr.msk.bf16.gmra.mrb[4].mxu1 %vm286_vm1, %v2715_v10  ;;  %2365 = vmatmul.mubr.msk.bf16.gmra.mrb[4].mxu0 %vm286_vm1, %v2929_v52  ;;  %v2136_v7 = vrot.slane %v1333_v45, 9  ;;  %v1374_v9 = vrot.slane %v1372_v43, 4  ;;  %v1375_v11 = vrot.slane %v648_v12, 5  ;;  %v1386_v15 = vrot.slane %v2738_v25, 5  ;;  %v1341_v40 = vld [vmem:[%s2698_s27 + $0x60] sm:$0xe] }
  0x3d   : > { %2296 = vmatprep.mubr.msk.bf16.mxu1 %vm286_vm1, %v2733_v18  ;;  %2368 = vmatprep.mubr.msk.bf16.mxu0 %vm286_vm1, %v2933_v5  ;;  %v1198_v17 = vsel %vm2749_vm4, %v1193_v22, %v1197_v63  ;;  %v1208_v1 = vsel %vm2749_vm4, %v1203_v31, %v1207_v47  ;;  %v1380_v32 = vsel %vm2969_vm7, %v2137_v55, %v1379_v35  ;;  %v2138_v25 = vrot.slane %v1335_v14, 9 }
  0x3e   : > { %v1383_v33 = vsel %vm2969_vm7, %v1381_v57, %v1382_v30  ;;  %v1373_v36 = vsel %vm2969_vm7, %v2136_v7, %v1372_v43  ;;  %v1376_v63 = vsel %vm2969_vm7, %v1374_v9, %v1375_v11  ;;  %v680_v37 = vshrl.u32 %v646_v13, 16  ;;  %v1342_v30 = vld [vmem:[%s2698_s27 + $0x6c] sm:$0xe] }
  0x3f   : > { %v683_v39 = vshll.u32 %v646_v13, 16  ;;  %v2127_v42 = vcombine.low %v1198_v17, %v1208_v1  ;;  %v1388_v45 = vrot.slane %v1386_v15, 4  ;;  %v1389_v35 = vrot.slane %v2741_v27, 5 }
  0x40   : > { %v689_v22 = vshll.u32 %v2941_v24, 16  ;;  %v682_v31 = vrot.slane %v680_v37, 4  ;;  %v693_v55 = vshrl.u32 %v2941_v24, 16  ;;  %v699_v57 = vshll.u32 %v648_v12, 16 }
  0x41   : > { %v685_v47 = vrot.slane %v683_v39, 5  ;;  %v2145_v43 = vcombine.low %v1373_v36, %v1376_v63  ;;  %v2161_v9 = vrot.slane %v1341_v40, 9  ;;  %v1597_v11 = vrot.slane %v2872_v44, 5 }
  0x42   : > { %v691_v7 = vrot.slane %v689_v22, 5  ;;  %v1387_v27 = vsel %vm2969_vm7, %v2138_v25, %v1386_v15  ;;  %v1393_v14 = vrot.slane %v2769_v50, 5  ;;  %v695_v12 = vrot.slane %v693_v55, 4  ;;  %v1336_v15 = vld [vmem:[%s2698_s27 + $0x24] sm:$0xe] }
  0x43   : > { %v686_v24 = vor.u32 %v685_v47, %v682_v31  ;;  %v1598_v13 = vsel %vm2969_vm7, %v2161_v9, %v1597_v11  ;;  %v1599_v17 = vrot.slane %v1597_v11, 4  ;;  %v1600_v1 = vrot.slane %v2908_v21, 5  ;;  %v1338_v11 = vld [vmem:[%s2698_s27 + $0x3c] sm:$0xe] }
  0x44   : > { %2297 = vmatmul.mubr.msk.bf16.gmra.mrb[8].mxu1 %vm286_vm1, %v2744_v29  ;;  %2369 = vmatmul.mubr.msk.bf16.gmra.mrb[8].mxu0 %vm286_vm1, %v2962_v46  ;;  %v2172_v36 = vrot.slane %v1342_v30, 9  ;;  %v701_v63 = vrot.slane %v699_v57, 5  ;;  %v1731_v37 = vrot.slane %v2900_v6, 5  ;;  %v1390_v50 = vsel %vm2969_vm7, %v1388_v45, %v1389_v35  ;;  %v1337_v35 = vld [vmem:[%s2698_s27 + $0x30] sm:$0xe] }
  0x45   : > { %2300 = vmatprep.mubr.msk.bf16.mxu1 %vm286_vm1, %v2766_v49  ;;  %2372 = vmatprep.mubr.msk.bf16.mxu0 %vm286_vm1, %v2967_v62  ;;  %v687_v44 = vrot.slane %v686_v24, 4  ;;  %v1400_v25 = vrot.slane %v2779_v58, 5  ;;  %v1601_v21 = vsel %vm2969_vm7, %v1599_v17, %v1600_v1  ;;  %v1734_v39 = vrot.slane %v2936_v16, 5  ;;  %v1339_v24 = vld [vmem:[%s2698_s27 + $0x48] sm:$0xe] }
  0x46   : > { %v3022_v22 = vcombine.low %v1598_v13, %v1601_v21  ;;  %v3026_v6 = vsel %vm2969_vm7, %v2172_v36, %v1731_v37  ;;  %v1611_v45 = vsel %vm311_vm0, %v2905_v19, 0  ;;  %v922_v58 = vsel %vm311_vm0, %v2881_v56, 0 }
  0x47   : > { %v692_v40 = vsel %vm2749_vm4, %v687_v44, %v691_v7  ;;  %v1733_v31 = vrot.slane %v1731_v37, 4  ;;  %v3033_v47 = vcombine.low %v1380_v32, %v1383_v33  ;;  %v2139_v16 = vrot.slane %v1336_v15, 9  ;;  %v2173_v32 = vld [vmem:[%s3247_s1 + $0x10] sm:$0x3] }
  0x48   : > { %v1396_v55 = vrot.slane %v2772_v51, 5  ;;  %v3040_v30 = vcombine.low %v1387_v27, %v1390_v50  ;;  %v2140_v56 = vrot.slane %v1337_v35, 9  ;;  %v1402_v51 = vrot.slane %v1400_v25, 4 }
  0x49   : > { %v1403_v34 = vrot.slane %v2787_v0, 5  ;;  %v1407_v33 = vrot.slane %v2813_v38, 5  ;;  %v1414_v27 = vrot.slane %v2834_v61, 5  ;;  %v2141_v13 = vrot.slane %v1338_v11, 9 }
  0x4a   : > { %v1401_v9 = vsel %vm2969_vm7, %v2140_v56, %v1400_v25  ;;  %v1410_v17 = vrot.slane %v2825_v48, 5  ;;  %v2142_v1 = vrot.slane %v1339_v24, 9  ;;  %v1417_v61 = vrot.slane %v2858_v28, 5  ;;  %v1340_v28 = vld [vmem:[%s2698_s27 + $0x54] sm:$0xe] }
  0x4b   : > { %v1409_v38 = vrot.slane %v1407_v33, 4  ;;  %v1416_v36 = vrot.slane %v1414_v27, 4  ;;  %v1421_v48 = vrot.slane %v2855_v26, 5  ;;  %v2143_v50 = vrot.slane %v1340_v28, 9 }
  0x4c   : > { %2301 = vmatmul.mubr.msk.bf16.gmra.mrb[12].mxu1 %vm286_vm1, %v2782_v59  ;;  %2373 = vmatmul.mubr.msk.bf16.gmra.mrb[12].mxu0 %vm286_vm1, %v2127_v42  ;;  %v1424_v25 = vrot.slane %v2884_v60, 5 }
  0x4d   : > { %2306 = vmatprep.mubr.msk.bf16.mxu1 %vm286_vm1, %v2709_v8  ;;  %v696_v8 = vor.u32 %v695_v12, %v691_v7  ;;  %2378 = vmatprep.mubr.msk.bf16.mxu0 %vm286_vm1, %v2145_v43  ;;  %v1395_v43 = vrot.slane %v1393_v14, 4  ;;  %v3044_v7 = vsel %vm2969_vm7, %v1733_v31, %v1734_v39  ;;  %v1411_v44 = vsel %vm2969_vm7, %v1409_v38, %v1410_v17  ;;  %v2604_v39 = vld [vmem:[%s2698_s27 + $0x6c] sm:$0xff]  }
  0x4e   : > { %v1423_v15 = vrot.slane %v1421_v48, 4  ;;  %v1422_v26 = vsel %vm2969_vm7, %v2143_v50, %v1421_v48 }
  0x4f   : > { %v697_v42 = vrot.slane %v696_v8, 4  ;;  %v1397_v0 = vsel %vm2969_vm7, %v1395_v43, %v1396_v55  ;;  %v1418_v8 = vsel %vm2969_vm7, %v1416_v36, %v1417_v61 }
  0x50   : > { %v1425_v21 = vsel %vm2969_vm7, %v1423_v15, %v1424_v25 }
  0x51   : > { %v702_v57 = vsel %vm2749_vm4, %v697_v42, %v701_v63  ;;  %v3163_v42 = vld [vmem:[%s3248_s2] ss:$0 sm:$0xff] }
  0x52   : > { %v2100_v19 = vcombine.low %v692_v40, %v702_v57 }
  0x54   : > { %2307 = vmatmul.mubr.msk.bf16.vlgmr.msra.gmra.mrb[0].mxu1 %vm286_vm1, %v2715_v10  ;;  %v2174_v10 = vcombine.low %v3026_v6, %v3044_v7  ;;  %2379 = vmatmul.mubr.msk.bf16.vlgmr.msra.gmra.mrb[0].mxu0 %vm286_vm1, %v3033_v47 }
  0x55   : > { %2310 = vmatprep.mubr.msk.bf16.mxu1 %vm286_vm1, %v2733_v18  ;;  %2323 = vmatpush3.bf16.msra.mxu1 %v922_v58  ;;  %v1394_v18 = vsel %vm2969_vm7, %v2139_v16, %v1393_v14 }
  0x56   : > { %2565 = vmatprep.subr.msk.bf16.mxu1 %vm311_vm0, %v2675_v2  ;;  %2395 = vmatpush3.bf16.msra.mxu0 %v1611_v45  ;;  %v1404_v2 = vsel %vm2969_vm7, %v1402_v51, %v1403_v34  ;;  %v2148_v12 = vcombine.low %v1394_v18, %v1397_v0 }
  0x57   : > { %2382 = vmatprep.mubr.msk.bf16.mxu0 %vm286_vm1, %v3040_v30  ;;  %2569 = vmatprep.subr.msk.bf16.mxu0 %vm311_vm0, %v2173_v32  ;;  %v2149_v14 = vcombine.low %v1401_v9, %v1404_v2 }
  0x5c   : > { %2311 = vmatmul.mubr.msk.bf16.gmra.mrb[4].mxu1 %vm286_vm1, %v2744_v29  ;;  %2383 = vmatmul.mubr.msk.bf16.gmra.mrb[4].mxu0 %vm286_vm1, %v2148_v12  ;;  %v1408_v29 = vsel %vm2969_vm7, %v2141_v13, %v1407_v33 }
  0x5d   : > { %2314 = vmatprep.mubr.msk.bf16.mxu1 %vm286_vm1, %v2766_v49  ;;  %2386 = vmatprep.mubr.msk.bf16.mxu0 %vm286_vm1, %v2149_v14  ;;  %v1415_v49 = vsel %vm2969_vm7, %v2142_v1, %v1414_v27  ;;  %v2150_v63 = vcombine.low %v1408_v29, %v1411_v44 }
  0x5e   : > { %v2151_v37 = vcombine.low %v1415_v49, %v1418_v8 }
  0x64   : > { %2315 = vmatmul.mubr.msk.bf16.gmra.mrb[8].mxu1 %vm286_vm1, %v2782_v59  ;;  %2387 = vmatmul.mubr.msk.bf16.gmra.mrb[8].mxu0 %vm286_vm1, %v2150_v63  ;;  %v2152_v59 = vcombine.low %v1422_v26, %v1425_v21 }
  0x65   : > { %2318 = vmatprep.mubr.msk.bf16.mxu1 %vm286_vm1, %v2818_v41  ;;  %2390 = vmatprep.mubr.msk.bf16.mxu0 %vm286_vm1, %v2151_v37  ;;  %v1745_v41 = vsel %vm311_vm0, %v2173_v32, 0 }
  0x6c   : > { %2319 = vmatmul.mubr.msk.bf16.gmra.mrb[12].mxu1 %vm286_vm1, %v2604_v39  ;;  %2391 = vmatmul.mubr.msk.bf16.gmra.mrb[12].mxu0 %vm286_vm1, %v2152_v59 }
  0x6d   : > { %2324 = vmatprep.mubr.msk.bf16.mxu1 %vm286_vm1, %v2100_v19  ;;  %2396 = vmatprep.mubr.msk.bf16.mxu0 %vm286_vm1, %v3033_v47 }
  0x74   : > { %2325 = vmatmul.mubr.msk.bf16.vlgmr.msra.gmra.mrb[0].mxu1 %vm286_vm1, %v2774_v53  ;;  %2397 = vmatmul.mubr.msk.bf16.vlgmr.msra.gmra.mrb[0].mxu0 %vm286_vm1, %v3040_v30 }
  0x75   : > { %2328 = vmatprep.mubr.msk.bf16.mxu1 %vm286_vm1, %v2801_v23  ;;  %2431 = vmatpush3.bf16.msra.mxu1 %v2686_v4 }
  0x76   : > { %2413 = vmatpush3.bf16.msra.mxu0 %v1745_v41  ;;  %2400 = vmatprep.mubr.msk.bf16.mxu0 %vm286_vm1, %v2148_v12 }
  0x7c   : > { %2329 = vmatmul.mubr.msk.bf16.gmra.mrb[4].mxu1 %vm286_vm1, %v2829_v54  ;;  %2401 = vmatmul.mubr.msk.bf16.gmra.mrb[4].mxu0 %vm286_vm1, %v2149_v14 }
  0x7d   : > { %2332 = vmatprep.mubr.msk.bf16.mxu1 %vm286_vm1, %v2850_v20  ;;  %2404 = vmatprep.mubr.msk.bf16.mxu0 %vm286_vm1, %v2150_v63 }
  0x84   : > { %2333 = vmatmul.mubr.msk.bf16.gmra.mrb[8].mxu1 %vm286_vm1, %v2929_v52  ;;  %2405 = vmatmul.mubr.msk.bf16.gmra.mrb[8].mxu0 %vm286_vm1, %v2151_v37 }
  0x85   : > { %2336 = vmatprep.mubr.msk.bf16.mxu1 %vm286_vm1, %v2933_v5  ;;  %2408 = vmatprep.mubr.msk.bf16.mxu0 %vm286_vm1, %v2152_v59 }
  0x8c   : > { %2337 = vmatmul.mubr.msk.bf16.gmra.mrb[12].mxu1 %vm286_vm1, %v2962_v46  ;;  %2409 = vmatmul.mubr.msk.bf16.gmra.mrb[12].mxu0 %vm286_vm1, %v3022_v22 }
  0x8d   : > { %2350 = vmatprep.mubr.msk.bf16.mxu1 %vm286_vm1, %v2929_v52  ;;  %2414 = vmatprep.mubr.msk.bf16.mxu0 %vm286_vm1, %v3040_v30 }
  0x94   : > { %2351 = vmatmul.mubr.msk.bf16.vlgmr.msra.gmra.mrb[8].mxu1 %vm286_vm1, %v2933_v5  ;;  %2415 = vmatmul.mubr.msk.bf16.vlgmr.msra.gmra.mrb[0].mxu0 %vm286_vm1, %v2148_v12 }
  0x95   : > { %2354 = vmatprep.mubr.msk.bf16.mxu1 %vm286_vm1, %v2962_v46  ;;  %2418 = vmatprep.mubr.msk.bf16.mxu0 %vm286_vm1, %v2149_v14 }
  0x9c   : > { %2355 = vmatmul.mubr.msk.bf16.gmra.mrb[12].mxu1 %vm286_vm1, %v2967_v62  ;;  %2419 = vmatmul.mubr.msk.bf16.gmra.mrb[4].mxu0 %vm286_vm1, %v2150_v63 }
  0x9d   : > { %2422 = vmatprep.mubr.msk.bf16.mxu0 %vm286_vm1, %v2151_v37 }
  0xa4   : > { %2423 = vmatmul.mubr.msk.bf16.gmra.mrb[8].mxu0 %vm286_vm1, %v2152_v59 }
  0xa5   : > { %2426 = vmatprep.mubr.msk.bf16.mxu0 %vm286_vm1, %v3022_v22 }
  0xac   : > { %2427 = vmatmul.mubr.msk.bf16.gmra.mrb[12].mxu0 %vm286_vm1, %v2174_v10 }
 0x147   : > { %v2326_v4 = vpop.f32.mrb[0].mxu1 }
 0x148   : > { %v958_v53 = vpop.f32.mrb[1].mxu1 }
 0x149   : > { %v2327_v23 = vpop.f32.mrb[2].mxu1 }
 0x14a   : > { %v961_v54 = vpop.f32.mrb[3].mxu1 }
 0x14f   : > { %v2330_v20 = vpop.f32.mrb[4].mxu1 }
 0x150   : > { %v974_v60 = vpop.f32.mrb[5].mxu1 }
 0x151   : > { %v2331_v52 = vpop.f32.mrb[6].mxu1 }
 0x152   : > { %v977_v5 = vpop.f32.mrb[7].mxu1 }
 0x167   : > { %v3154_v46 = vpop.f32.mrb[8].mxu1  ;;  %v2416_v40 = vpop.f32.mrb[0].mxu0 }
 0x168   : > { %v3156_v62 = vpop.f32.mrb[9].mxu1  ;;  %v2432_v6 = vadd.f32 %v2416_v40, %v2326_v4  ;;  %v1781_v45 = vpop.f32.mrb[1].mxu0 }
 0x169   : > { %v3158_v3 = vpop.f32.mrb[10].mxu1  ;;  %v2433_v35 = vadd.f32 %v1781_v45, %v958_v53  ;;  %v2417_v58 = vpop.f32.mrb[2].mxu0 }
 0x16a   : > { %v3165_v22 = vpop.f32.mrb[11].mxu1  ;;  %v1869_v31 = vadd.f32 %v2432_v6, %v3163_v42  ;;  %v2434_v47 = vadd.f32 %v2417_v58, %v2327_v23  ;;  %v1784_v16 = vpop.f32.mrb[3].mxu0 }
 0x16b   : > { %v1867_v55 = vadd.f32 %v2433_v35, %v3163_v42  ;;  %v2435_v57 = vadd.f32 %v1784_v16, %v961_v54 }
 0x16c   : > { %vm1885_vm8 = vcmp.gt.f32.partialorder %v1869_v31, 0.0  ;;  %v1901_v30 = vmul.f32 0.1, %v1869_v31  ;;  %v1870_v43 = vadd.f32 %v2434_v47, %v3163_v42 }
 0x16d   : > { %vm1883_vm10 = vcmp.gt.f32.partialorder %v1867_v55, 0.0  ;;  %v1899_v7 = vmul.f32 0.1, %v1867_v55  ;;  %v1868_v56 = vadd.f32 %v2435_v57, %v3163_v42 }
 0x16e   : > { %v1917_v34 = vsel %vm1885_vm8, %v1869_v31, %v1901_v30  ;;  %vm1886_vm11 = vcmp.gt.f32.partialorder %v1870_v43, 0.0  ;;  %v1902_v10 = vmul.f32 0.1, %v1870_v43 }
 0x16f   : > { %v3176_v19 = vpop.f32.mrb[12].mxu1  ;;  %1934 = vst.msk [vmem:[%s3173_s20 + $0x10] sm:$0xff] %vm1931_vm9, %v1917_v34  ;;  %v1915_v18 = vsel %vm1883_vm10, %v1867_v55, %v1899_v7  ;;  %vm1884_vm12 = vcmp.gt.f32.partialorder %v1868_v56, 0.0  ;;  %v1900_v0 = vmul.f32 0.1, %v1868_v56  ;;  %v2420_v33 = vpop.f32.mrb[4].mxu0 }
 0x170   : > { %v3179_v51 = vpop.f32.mrb[13].mxu1  ;;  %1932 = vst.msk [vmem:[%s3173_s20] sm:$0xff] %vm1931_vm9, %v1915_v18  ;;  %v1918_v2 = vsel %vm1886_vm11, %v1870_v43, %v1902_v10  ;;  %v2436_v11 = vadd.f32 %v2420_v33, %v2330_v20  ;;  %v1797_v27 = vpop.f32.mrb[5].mxu0 }
 0x171   : > { %v3181_v32 = vpop.f32.mrb[14].mxu1  ;;  %1935 = vst.msk [vmem:[%s3173_s20 + $0x18] sm:$0xff] %vm1931_vm9, %v1918_v2  ;;  %v1916_v24 = vsel %vm1884_vm12, %v1868_v56, %v1900_v0  ;;  %v2437_v12 = vadd.f32 %v1797_v27, %v974_v60  ;;  %v2421_v14 = vpop.f32.mrb[6].mxu0 }
 0x172   : > { %v3185_v9 = vpop.f32.mrb[15].mxu1  ;;  %1933 = vst.msk [vmem:[%s3173_s20 + $0x8] sm:$0xff] %vm1931_vm9, %v1916_v24  ;;  %v1873_v13 = vadd.f32 %v2436_v11, %v3163_v42  ;;  %v2438_v38 = vadd.f32 %v2421_v14, %v2331_v52  ;;  %v1800_v17 = vpop.f32.mrb[7].mxu0 }
 0x173   : > { %v1871_v1 = vadd.f32 %v2437_v12, %v3163_v42  ;;  %v2439_v36 = vadd.f32 %v1800_v17, %v977_v5 }
 0x174   : > { %vm1889_vm13 = vcmp.gt.f32.partialorder %v1873_v13, 0.0  ;;  %v1905_v61 = vmul.f32 0.1, %v1873_v13  ;;  %v1874_v29 = vadd.f32 %v2438_v38, %v3163_v42 }
 0x175   : > { %vm1887_vm14 = vcmp.gt.f32.partialorder %v1871_v1, 0.0  ;;  %v1903_v44 = vmul.f32 0.1, %v1871_v1  ;;  %v1872_v48 = vadd.f32 %v2439_v36, %v3163_v42 }
 0x176   : > { %v1921_v49 = vsel %vm1889_vm13, %v1873_v13, %v1905_v61  ;;  %vm1890_vm15 = vcmp.gt.f32.partialorder %v1874_v29, 0.0  ;;  %v1906_v8 = vmul.f32 0.1, %v1874_v29 }
 0x177   : > { %1938 = vst.msk [vmem:[%s3173_s20 + $0x30] sm:$0xff] %vm1931_vm9, %v1921_v49  ;;  %v1919_v28 = vsel %vm1887_vm14, %v1871_v1, %v1903_v44  ;;  %vm1888_vm0 = vcmp.gt.f32.partialorder %v1872_v48, 0.0  ;;  %v1904_v63 = vmul.f32 0.1, %v1872_v48  ;;  %v2424_v37 = vpop.f32.mrb[8].mxu0 }
 0x178   : > { %1936 = vst.msk [vmem:[%s3173_s20 + $0x20] sm:$0xff] %vm1931_vm9, %v1919_v28  ;;  %v1922_v50 = vsel %vm1890_vm15, %v1874_v29, %v1906_v8  ;;  %v2440_v15 = vadd.f32 %v2424_v37, %v3154_v46  ;;  %v1813_v25 = vpop.f32.mrb[9].mxu0 }
 0x179   : > { %1939 = vst.msk [vmem:[%s3173_s20 + $0x38] sm:$0xff] %vm1931_vm9, %v1922_v50  ;;  %v1920_v26 = vsel %vm1888_vm0, %v1872_v48, %v1904_v63  ;;  %v2441_v21 = vadd.f32 %v1813_v25, %v3156_v62  ;;  %v2425_v39 = vpop.f32.mrb[10].mxu0 }
 0x17a   : > { %1937 = vst.msk [vmem:[%s3173_s20 + $0x28] sm:$0xff] %vm1931_vm9, %v1920_v26  ;;  %v1877_v59 = vadd.f32 %v2440_v15, %v3163_v42  ;;  %v2442_v41 = vadd.f32 %v2425_v39, %v3158_v3  ;;  %v1816_v4 = vpop.f32.mrb[11].mxu0 }
 0x17b   : > { %v1875_v53 = vadd.f32 %v2441_v21, %v3163_v42  ;;  %v2443_v23 = vadd.f32 %v1816_v4, %v3165_v22 }
 0x17c   : > { %vm1893_vm1 = vcmp.gt.f32.partialorder %v1877_v59, 0.0  ;;  %v1909_v54 = vmul.f32 0.1, %v1877_v59  ;;  %v1878_v20 = vadd.f32 %v2442_v41, %v3163_v42 }
 0x17d   : > { %vm1891_vm2 = vcmp.gt.f32.partialorder %v1875_v53, 0.0  ;;  %v1907_v60 = vmul.f32 0.1, %v1875_v53  ;;  %v1876_v52 = vadd.f32 %v2443_v23, %v3163_v42 }
 0x17e   : > { %v1925_v5 = vsel %vm1893_vm1, %v1877_v59, %v1909_v54  ;;  %vm1894_vm3 = vcmp.gt.f32.partialorder %v1878_v20, 0.0  ;;  %v1910_v46 = vmul.f32 0.1, %v1878_v20 }
 0x17f   : > { %1942 = vst.msk [vmem:[%s3173_s20 + $0x50] sm:$0xff] %vm1931_vm9, %v1925_v5  ;;  %v1923_v62 = vsel %vm1891_vm2, %v1875_v53, %v1907_v60  ;;  %vm1892_vm4 = vcmp.gt.f32.partialorder %v1876_v52, 0.0  ;;  %v1908_v3 = vmul.f32 0.1, %v1876_v52  ;;  %v2428_v40 = vpop.f32.mrb[12].mxu0 }
 0x180   : > { %1940 = vst.msk [vmem:[%s3173_s20 + $0x40] sm:$0xff] %vm1931_vm9, %v1923_v62  ;;  %v1926_v22 = vsel %vm1894_vm3, %v1878_v20, %v1910_v46  ;;  %v2444_v6 = vadd.f32 %v2428_v40, %v3176_v19  ;;  %v1829_v45 = vpop.f32.mrb[13].mxu0 }
 0x181   : > { %1943 = vst.msk [vmem:[%s3173_s20 + $0x58] sm:$0xff] %vm1931_vm9, %v1926_v22  ;;  %v1924_v35 = vsel %vm1892_vm4, %v1876_v52, %v1908_v3  ;;  %v2445_v58 = vadd.f32 %v1829_v45, %v3179_v51  ;;  %v2429_v31 = vpop.f32.mrb[14].mxu0 }
 0x182   : > { %1941 = vst.msk [vmem:[%s3173_s20 + $0x48] sm:$0xff] %vm1931_vm9, %v1924_v35  ;;  %v1881_v47 = vadd.f32 %v2444_v6, %v3163_v42  ;;  %v2446_v16 = vadd.f32 %v2429_v31, %v3181_v32  ;;  %v1832_v55 = vpop.f32.mrb[15].mxu0 }
 0x183   : > { %v1879_v57 = vadd.f32 %v2445_v58, %v3163_v42  ;;  %v2447_v30 = vadd.f32 %v1832_v55, %v3185_v9 }
 0x184   : > { %vm1897_vm5 = vcmp.gt.f32.partialorder %v1881_v47, 0.0  ;;  %v1913_v43 = vmul.f32 0.1, %v1881_v47  ;;  %v1882_v19 = vadd.f32 %v2446_v16, %v3163_v42 }
 0x185   : > { %vm1895_vm6 = vcmp.gt.f32.partialorder %v1879_v57, 0.0  ;;  %v1911_v7 = vmul.f32 0.1, %v1879_v57  ;;  %v1880_v56 = vadd.f32 %v2447_v30, %v3163_v42 }
 0x186   : > { %v1929_v51 = vsel %vm1897_vm5, %v1881_v47, %v1913_v43  ;;  %vm1898_vm7 = vcmp.gt.f32.partialorder %v1882_v19, 0.0  ;;  %v1914_v34 = vmul.f32 0.1, %v1882_v19 }
 0x187   : > { %1946 = vst.msk [vmem:[%s3173_s20 + $0x70] sm:$0xff] %vm1931_vm9, %v1929_v51  ;;  %v1927_v10 = vsel %vm1895_vm6, %v1879_v57, %v1911_v7  ;;  %vm1896_vm8 = vcmp.gt.f32.partialorder %v1880_v56, 0.0  ;;  %v1912_v32 = vmul.f32 0.1, %v1880_v56 }
 0x188   : > { %1944 = vst.msk [vmem:[%s3173_s20 + $0x60] sm:$0xff] %vm1931_vm9, %v1927_v10  ;;  %v1930_v18 = vsel %vm1898_vm7, %v1882_v19, %v1914_v34 }
 0x189   : > { %1947 = vst.msk [vmem:[%s3173_s20 + $0x78] sm:$0xff] %vm1931_vm9, %v1930_v18  ;;  %v1928_v0 = vsel %vm1896_vm8, %v1880_v56, %v1912_v32 }
 0x18a   : > { %1945 = vst.msk [vmem:[%s3173_s20 + $0x68] sm:$0xff] %vm1931_vm9, %v1928_v0 }
 0x18b PF: > { %s13_s14 = sadd.s32 1, %s2627_s14   ;;  %s3254_s12 = smov %s2623_s13 }
 0x18c   : > { %p10_p5 = scmp.ge.s32.totalorder %s13_s14, 6   ;;  %s3255_s13 = smov %s3257_s15 }
 0x18e   :  { %12 = sbr.rel (!%p10_p5) target bundleno = 2 (0x2), region = 76 }

</bundles_post_ra>
